<compile_context>
chip_gen: v5e
topology: v5e:2x2
jax: 0.10.0
libtpu: 0.0.40
codegen_flags: <defaults>
</compile_context>

<pallas_src>
import functools

import jax
import jax.numpy as jnp
from jax import lax
from jax.experimental import pallas as pl
from jax.experimental.pallas import tpu as pltpu


def _conv3x3_stats_kernel(x_ref, w_ref, y_ref, ssum_ref, ssq_ref, *, H, W, KH, KW):
    """One batch element per grid step.

    x_ref   : (H+KH-1, W+KW-1, Cin)  zero-padded image (batch dim squeezed)
    w_ref   : (KH*KW, Cin, Cout)     conv taps, channels-last
    y_ref   : (H, W, Cout)           conv output for this image (batch dim squeezed)
    ssum_ref: (1, Cout) f32          per-channel sum    (accumulated over the batch grid)
    ssq_ref : (1, Cout) f32          per-channel sum sq (accumulated over the batch grid)
    """
    cin = w_ref.shape[1]
    cout = w_ref.shape[2]

    acc = jnp.zeros((H * W, cout), dtype=jnp.float32)
    for kh in range(KH):                      # 9 taps, statically unrolled
        for kw in range(KW):
            tap = x_ref[pl.ds(kh, H), pl.ds(kw, W), :]           # (H, W, Cin) window
            tap = tap.reshape(H * W, cin).astype(jnp.float32)
            wk = w_ref[kh * KW + kw].astype(jnp.float32)         # (Cin, Cout)
            acc = acc + jnp.dot(tap, wk, preferred_element_type=jnp.float32)

    y_ref[...] = acc.reshape(H, W, cout).astype(y_ref.dtype)

    @pl.when(pl.program_id(0) == 0)
    def _():
        ssum_ref[...] = jnp.zeros_like(ssum_ref)
        ssq_ref[...] = jnp.zeros_like(ssq_ref)

    ssum_ref[...] += jnp.sum(acc, axis=0, keepdims=True)
    ssq_ref[...] += jnp.sum(acc * acc, axis=0, keepdims=True)


def _bn_apply_kernel(y_ref, ssum_ref, ssq_ref, gamma_ref, beta_ref, o_ref, *,
                     inv_count, eps):
    """Training-mode BatchNorm2d applied to the conv output (one image per grid step)."""
    mean = ssum_ref[...] * inv_count                         # (1, Cout)
    var = ssq_ref[...] * inv_count - mean * mean             # biased batch variance
    scale = gamma_ref[...] * lax.rsqrt(var + eps)            # (1, Cout), rsqrt -> EUP
    shift = beta_ref[...] - mean * scale
    y = y_ref[...].astype(jnp.float32)                       # (H, W, Cout)
    o_ref[...] = (y * scale.reshape(1, 1, -1)
                  + shift.reshape(1, 1, -1)).astype(o_ref.dtype)


def conv_bn_forward(x_nchw, weight, gamma, beta, *, eps=1e-5):
    """Forward of ConvBn2d: 3x3 'same' conv (no bias) + training-mode BatchNorm2d.

    x_nchw : (N, Cin, H, W)
    weight : (Cout, Cin, KH, KW)   (PyTorch OIHW layout)
    gamma  : (Cout,)  BN weight;   beta : (Cout,)  BN bias
    returns: (N, Cout, H, W)
    """
    n, cin, h, w = x_nchw.shape
    cout, cin_w, kh, kw = weight.shape
    assert cin == cin_w
    ph, pw = kh // 2, kw // 2                 # module default: kernel_size=3, padding=1
    hp, wp = h + 2 * ph, w + 2 * pw
    itemsize = jnp.dtype(x_nchw.dtype).itemsize

    # Wrapper-side layout glue: NCHW -> NHWC (channels on lanes) + explicit zero halo so
    # the kernel's 9 taps are plain static slices.
    x_nhwc = jnp.transpose(x_nchw, (0, 2, 3, 1))
    x_pad = jnp.pad(x_nhwc, ((0, 0), (ph, ph), (pw, pw), (0, 0)))
    w_taps = jnp.transpose(weight, (2, 3, 1, 0)).reshape(kh * kw, cin, cout)

    conv_kernel = functools.partial(_conv3x3_stats_kernel, H=h, W=w, KH=kh, KW=kw)
    y_nhwc, ssum, ssq = pl.pallas_call(
        conv_kernel,
        grid=(n,),
        in_specs=[
            # one padded image per grid step (auto double-buffered streaming from HBM)
            pl.BlockSpec((None, hp, wp, cin), lambda i: (i, 0, 0, 0)),
            # full weights stay VMEM-resident (constant block index)
            pl.BlockSpec((kh * kw, cin, cout), lambda i: (0, 0, 0)),
        ],
        out_specs=[
            pl.BlockSpec((None, h, w, cout), lambda i: (i, 0, 0, 0)),
            pl.BlockSpec((1, cout), lambda i: (0, 0)),   # grid-resident accumulators
            pl.BlockSpec((1, cout), lambda i: (0, 0)),
        ],
        out_shape=(
            jax.ShapeDtypeStruct((n, h, w, cout), x_nchw.dtype),
            jax.ShapeDtypeStruct((1, cout), jnp.float32),
            jax.ShapeDtypeStruct((1, cout), jnp.float32),
        ),
        # Batch axis must be "arbitrary": the stats outputs accumulate across it.
        compiler_params=pltpu.CompilerParams(dimension_semantics=("arbitrary",)),
        cost_estimate=pl.CostEstimate(
            flops=2 * n * h * w * cin * cout * kh * kw,
            transcendentals=0,
            bytes_accessed=(n * hp * wp * cin + kh * kw * cin * cout
                            + n * h * w * cout) * itemsize,
        ),
    )(x_pad, w_taps)

    bn_kernel = functools.partial(_bn_apply_kernel,
                                  inv_count=1.0 / float(n * h * w),
                                  eps=float(eps))
    out_nhwc = pl.pallas_call(
        bn_kernel,
        grid=(n,),
        in_specs=[
            pl.BlockSpec((None, h, w, cout), lambda i: (i, 0, 0, 0)),
            pl.BlockSpec((1, cout), lambda i: (0, 0)),
            pl.BlockSpec((1, cout), lambda i: (0, 0)),
            pl.BlockSpec((1, cout), lambda i: (0, 0)),
            pl.BlockSpec((1, cout), lambda i: (0, 0)),
        ],
        out_specs=pl.BlockSpec((None, h, w, cout), lambda i: (i, 0, 0, 0)),
        out_shape=jax.ShapeDtypeStruct((n, h, w, cout), x_nchw.dtype),
        # purely element-wise per image -> independent steps (shardable on v7x megacore)
        compiler_params=pltpu.CompilerParams(dimension_semantics=("parallel",)),
        cost_estimate=pl.CostEstimate(
            flops=2 * n * h * w * cout,
            transcendentals=cout,
            bytes_accessed=2 * n * h * w * cout * itemsize,
        ),
    )(y_nhwc, ssum, ssq,
      gamma.astype(jnp.float32).reshape(1, cout),
      beta.astype(jnp.float32).reshape(1, cout))

    # TODO(synk): BatchNorm2d's running_mean/running_var buffer update (training-time side
    # effect) is not materialized; it does not affect the forward output.
    # TODO(synk): for very large H*W, add an output-row grid axis with a pl.Element halo on H
    # so a full padded image need not be VMEM-resident per step (v7x: 64 MiB VMEM per TC).
    return jnp.transpose(out_nhwc, (0, 3, 1, 2))


if __name__ == "__main__":
    key = jax.random.PRNGKey(0)
    k_x, k_w = jax.random.split(key, 2)

    N, C_IN, C_OUT, H, W = 2, 4, 8, 16, 16
    KH = KW = 3

    x = jax.random.normal(k_x, (N, C_IN, H, W), dtype=jnp.float32)
    weight = jax.random.normal(k_w, (C_OUT, C_IN, KH, KW), dtype=jnp.float32)
    weight = weight * (2.0 / (C_IN * KH * KW)) ** 0.5     # deterministic kaiming-ish init
    gamma = jnp.ones((C_OUT,), dtype=jnp.float32)         # BatchNorm2d default weight init
    beta = jnp.zeros((C_OUT,), dtype=jnp.float32)         # BatchNorm2d default bias init

    out = conv_bn_forward(x, weight, gamma, beta, eps=1e-5)
    jax.block_until_ready(out)

    # Pure-JAX reference mirroring the PyTorch forward exactly:
    # Conv2d(k=3, pad=1, bias=False) followed by training-mode BatchNorm2d.
    y = lax.conv_general_dilated(
        x, weight, window_strides=(1, 1), padding=((1, 1), (1, 1)),
        dimension_numbers=("NCHW", "OIHW", "NCHW"))
    mean = jnp.mean(y, axis=(0, 2, 3), keepdims=True)
    var = jnp.mean(jnp.square(y - mean), axis=(0, 2, 3), keepdims=True)  # biased variance
    ref = ((y - mean) * lax.rsqrt(var + 1e-5)
           * gamma.reshape(1, -1, 1, 1) + beta.reshape(1, -1, 1, 1))

    assert out.shape == (N, C_OUT, H, W)
    assert jnp.allclose(out, ref, atol=1e-4, rtol=1e-4), float(jnp.max(jnp.abs(out - ref)))

    print("KERNEL_OK")
</pallas_src>

<mosaic_0001>
module attributes {stable_mosaic.version = 11 : i64} {
  func.func @_conv3x3_stats_kernel(%arg0: i32, %arg1: memref<1x18x18x4xf32, #tpu.memory_space<vmem>>, %arg2: memref<9x4x8xf32, #tpu.memory_space<vmem>>, %arg3: memref<1x16x16x8xf32, #tpu.memory_space<vmem>>, %arg4: memref<1x8xf32, #tpu.memory_space<vmem>>, %arg5: memref<1x8xf32, #tpu.memory_space<vmem>>) attributes {dimension_semantics = [#tpu.dimension_semantics<arbitrary>], iteration_bounds = array<i64: 2>, scalar_prefetch = 0 : i64, scratch_operands = 0 : i64, tpu.core_type = #tpu.core_type<tc>, window_params = [{transform_indices = @transform_0, window_bounds = array<i64: 1, 18, 18, 4>}, {pipeline_mode = #tpu.pipeline_mode<synchronous>, transform_indices = @transform_1, window_bounds = array<i64: 9, 4, 8>}, {transform_indices = @transform_2, window_bounds = array<i64: 1, 16, 16, 8>}, {pipeline_mode = #tpu.pipeline_mode<synchronous>, transform_indices = @transform_3, window_bounds = array<i64: 1, 8>}, {pipeline_mode = #tpu.pipeline_mode<synchronous>, transform_indices = @transform_4, window_bounds = array<i64: 1, 8>}]} {
    %cst = arith.constant 0.000000e+00 : f32
    %0 = vector.broadcast %cst : f32 to vector<256x8xf32>
    %c0 = arith.constant 0 : index
    %c0_0 = arith.constant 0 : index
    %c0_1 = arith.constant 0 : index
    %c0_2 = arith.constant 0 : index
    %1 = vector.load %arg1[%c0, %c0_0, %c0_1, %c0_2] : memref<1x18x18x4xf32, #tpu.memory_space<vmem>>, vector<1x16x16x4xf32>
    %2 = vector.shape_cast %1 : vector<1x16x16x4xf32> to vector<16x16x4xf32>
    %3 = vector.shape_cast %2 : vector<16x16x4xf32> to vector<256x4xf32>
    %c0_3 = arith.constant 0 : index
    %c0_4 = arith.constant 0 : index
    %c0_5 = arith.constant 0 : index
    %4 = vector.load %arg2[%c0_3, %c0_4, %c0_5] : memref<9x4x8xf32, #tpu.memory_space<vmem>>, vector<1x4x8xf32>
    %5 = vector.shape_cast %4 : vector<1x4x8xf32> to vector<4x8xf32>
    %cst_6 = arith.constant dense<0.000000e+00> : vector<256x8xf32>
    %6 = tpu.matmul %3, %5, %cst_6 {dimension_numbers = #tpu.dot_dimension_numbers<[1], [0], [0], [1], [0, 0, 1, 1], [], []>} : vector<256x4xf32>, vector<4x8xf32>, vector<256x8xf32> -> vector<256x8xf32>
    %7 = arith.addf %0, %6 : vector<256x8xf32>
    %c0_7 = arith.constant 0 : index
    %c0_8 = arith.constant 0 : index
    %c1 = arith.constant 1 : index
    %c0_9 = arith.constant 0 : index
    %8 = vector.load %arg1[%c0_7, %c0_8, %c1, %c0_9] : memref<1x18x18x4xf32, #tpu.memory_space<vmem>>, vector<1x16x16x4xf32>
    %9 = vector.shape_cast %8 : vector<1x16x16x4xf32> to vector<16x16x4xf32>
    %10 = vector.shape_cast %9 : vector<16x16x4xf32> to vector<256x4xf32>
    %c1_10 = arith.constant 1 : index
    %c0_11 = arith.constant 0 : index
    %c0_12 = arith.constant 0 : index
    %11 = vector.load %arg2[%c1_10, %c0_11, %c0_12] : memref<9x4x8xf32, #tpu.memory_space<vmem>>, vector<1x4x8xf32>
    %12 = vector.shape_cast %11 : vector<1x4x8xf32> to vector<4x8xf32>
    %cst_13 = arith.constant dense<0.000000e+00> : vector<256x8xf32>
    %13 = tpu.matmul %10, %12, %cst_13 {dimension_numbers = #tpu.dot_dimension_numbers<[1], [0], [0], [1], [0, 0, 1, 1], [], []>} : vector<256x4xf32>, vector<4x8xf32>, vector<256x8xf32> -> vector<256x8xf32>
    %14 = arith.addf %7, %13 : vector<256x8xf32>
    %c0_14 = arith.constant 0 : index
    %c0_15 = arith.constant 0 : index
    %c2 = arith.constant 2 : index
    %c0_16 = arith.constant 0 : index
    %15 = vector.load %arg1[%c0_14, %c0_15, %c2, %c0_16] : memref<1x18x18x4xf32, #tpu.memory_space<vmem>>, vector<1x16x16x4xf32>
    %16 = vector.shape_cast %15 : vector<1x16x16x4xf32> to vector<16x16x4xf32>
    %17 = vector.shape_cast %16 : vector<16x16x4xf32> to vector<256x4xf32>
    %c2_17 = arith.constant 2 : index
    %c0_18 = arith.constant 0 : index
    %c0_19 = arith.constant 0 : index
    %18 = vector.load %arg2[%c2_17, %c0_18, %c0_19] : memref<9x4x8xf32, #tpu.memory_space<vmem>>, vector<1x4x8xf32>
    %19 = vector.shape_cast %18 : vector<1x4x8xf32> to vector<4x8xf32>
    %cst_20 = arith.constant dense<0.000000e+00> : vector<256x8xf32>
    %20 = tpu.matmul %17, %19, %cst_20 {dimension_numbers = #tpu.dot_dimension_numbers<[1], [0], [0], [1], [0, 0, 1, 1], [], []>} : vector<256x4xf32>, vector<4x8xf32>, vector<256x8xf32> -> vector<256x8xf32>
    %21 = arith.addf %14, %20 : vector<256x8xf32>
    %c0_21 = arith.constant 0 : index
    %c1_22 = arith.constant 1 : index
    %c0_23 = arith.constant 0 : index
    %c0_24 = arith.constant 0 : index
    %22 = vector.load %arg1[%c0_21, %c1_22, %c0_23, %c0_24] : memref<1x18x18x4xf32, #tpu.memory_space<vmem>>, vector<1x16x16x4xf32>
    %23 = vector.shape_cast %22 : vector<1x16x16x4xf32> to vector<16x16x4xf32>
    %24 = vector.shape_cast %23 : vector<16x16x4xf32> to vector<256x4xf32>
    %c3 = arith.constant 3 : index
    %c0_25 = arith.constant 0 : index
    %c0_26 = arith.constant 0 : index
    %25 = vector.load %arg2[%c3, %c0_25, %c0_26] : memref<9x4x8xf32, #tpu.memory_space<vmem>>, vector<1x4x8xf32>
    %26 = vector.shape_cast %25 : vector<1x4x8xf32> to vector<4x8xf32>
    %cst_27 = arith.constant dense<0.000000e+00> : vector<256x8xf32>
    %27 = tpu.matmul %24, %26, %cst_27 {dimension_numbers = #tpu.dot_dimension_numbers<[1], [0], [0], [1], [0, 0, 1, 1], [], []>} : vector<256x4xf32>, vector<4x8xf32>, vector<256x8xf32> -> vector<256x8xf32>
    %28 = arith.addf %21, %27 : vector<256x8xf32>
    %c0_28 = arith.constant 0 : index
    %c1_29 = arith.constant 1 : index
    %c1_30 = arith.constant 1 : index
    %c0_31 = arith.constant 0 : index
    %29 = vector.load %arg1[%c0_28, %c1_29, %c1_30, %c0_31] : memref<1x18x18x4xf32, #tpu.memory_space<vmem>>, vector<1x16x16x4xf32>
    %30 = vector.shape_cast %29 : vector<1x16x16x4xf32> to vector<16x16x4xf32>
    %31 = vector.shape_cast %30 : vector<16x16x4xf32> to vector<256x4xf32>
    %c4 = arith.constant 4 : index
    %c0_32 = arith.constant 0 : index
    %c0_33 = arith.constant 0 : index
    %32 = vector.load %arg2[%c4, %c0_32, %c0_33] : memref<9x4x8xf32, #tpu.memory_space<vmem>>, vector<1x4x8xf32>
    %33 = vector.shape_cast %32 : vector<1x4x8xf32> to vector<4x8xf32>
    %cst_34 = arith.constant dense<0.000000e+00> : vector<256x8xf32>
    %34 = tpu.matmul %31, %33, %cst_34 {dimension_numbers = #tpu.dot_dimension_numbers<[1], [0], [0], [1], [0, 0, 1, 1], [], []>} : vector<256x4xf32>, vector<4x8xf32>, vector<256x8xf32> -> vector<256x8xf32>
    %35 = arith.addf %28, %34 : vector<256x8xf32>
    %c0_35 = arith.constant 0 : index
    %c1_36 = arith.constant 1 : index
    %c2_37 = arith.constant 2 : index
    %c0_38 = arith.constant 0 : index
    %36 = vector.load %arg1[%c0_35, %c1_36, %c2_37, %c0_38] : memref<1x18x18x4xf32, #tpu.memory_space<vmem>>, vector<1x16x16x4xf32>
    %37 = vector.shape_cast %36 : vector<1x16x16x4xf32> to vector<16x16x4xf32>
    %38 = vector.shape_cast %37 : vector<16x16x4xf32> to vector<256x4xf32>
    %c5 = arith.constant 5 : index
    %c0_39 = arith.constant 0 : index
    %c0_40 = arith.constant 0 : index
    %39 = vector.load %arg2[%c5, %c0_39, %c0_40] : memref<9x4x8xf32, #tpu.memory_space<vmem>>, vector<1x4x8xf32>
    %40 = vector.shape_cast %39 : vector<1x4x8xf32> to vector<4x8xf32>
    %cst_41 = arith.constant dense<0.000000e+00> : vector<256x8xf32>
    %41 = tpu.matmul %38, %40, %cst_41 {dimension_numbers = #tpu.dot_dimension_numbers<[1], [0], [0], [1], [0, 0, 1, 1], [], []>} : vector<256x4xf32>, vector<4x8xf32>, vector<256x8xf32> -> vector<256x8xf32>
    %42 = arith.addf %35, %41 : vector<256x8xf32>
    %c0_42 = arith.constant 0 : index
    %c2_43 = arith.constant 2 : index
    %c0_44 = arith.constant 0 : index
    %c0_45 = arith.constant 0 : index
    %43 = vector.load %arg1[%c0_42, %c2_43, %c0_44, %c0_45] : memref<1x18x18x4xf32, #tpu.memory_space<vmem>>, vector<1x16x16x4xf32>
    %44 = vector.shape_cast %43 : vector<1x16x16x4xf32> to vector<16x16x4xf32>
    %45 = vector.shape_cast %44 : vector<16x16x4xf32> to vector<256x4xf32>
    %c6 = arith.constant 6 : index
    %c0_46 = arith.constant 0 : index
    %c0_47 = arith.constant 0 : index
    %46 = vector.load %arg2[%c6, %c0_46, %c0_47] : memref<9x4x8xf32, #tpu.memory_space<vmem>>, vector<1x4x8xf32>
    %47 = vector.shape_cast %46 : vector<1x4x8xf32> to vector<4x8xf32>
    %cst_48 = arith.constant dense<0.000000e+00> : vector<256x8xf32>
    %48 = tpu.matmul %45, %47, %cst_48 {dimension_numbers = #tpu.dot_dimension_numbers<[1], [0], [0], [1], [0, 0, 1, 1], [], []>} : vector<256x4xf32>, vector<4x8xf32>, vector<256x8xf32> -> vector<256x8xf32>
    %49 = arith.addf %42, %48 : vector<256x8xf32>
    %c0_49 = arith.constant 0 : index
    %c2_50 = arith.constant 2 : index
    %c1_51 = arith.constant 1 : index
    %c0_52 = arith.constant 0 : index
    %50 = vector.load %arg1[%c0_49, %c2_50, %c1_51, %c0_52] : memref<1x18x18x4xf32, #tpu.memory_space<vmem>>, vector<1x16x16x4xf32>
    %51 = vector.shape_cast %50 : vector<1x16x16x4xf32> to vector<16x16x4xf32>
    %52 = vector.shape_cast %51 : vector<16x16x4xf32> to vector<256x4xf32>
    %c7 = arith.constant 7 : index
    %c0_53 = arith.constant 0 : index
    %c0_54 = arith.constant 0 : index
    %53 = vector.load %arg2[%c7, %c0_53, %c0_54] : memref<9x4x8xf32, #tpu.memory_space<vmem>>, vector<1x4x8xf32>
    %54 = vector.shape_cast %53 : vector<1x4x8xf32> to vector<4x8xf32>
    %cst_55 = arith.constant dense<0.000000e+00> : vector<256x8xf32>
    %55 = tpu.matmul %52, %54, %cst_55 {dimension_numbers = #tpu.dot_dimension_numbers<[1], [0], [0], [1], [0, 0, 1, 1], [], []>} : vector<256x4xf32>, vector<4x8xf32>, vector<256x8xf32> -> vector<256x8xf32>
    %56 = arith.addf %49, %55 : vector<256x8xf32>
    %c0_56 = arith.constant 0 : index
    %c2_57 = arith.constant 2 : index
    %c2_58 = arith.constant 2 : index
    %c0_59 = arith.constant 0 : index
    %57 = vector.load %arg1[%c0_56, %c2_57, %c2_58, %c0_59] : memref<1x18x18x4xf32, #tpu.memory_space<vmem>>, vector<1x16x16x4xf32>
    %58 = vector.shape_cast %57 : vector<1x16x16x4xf32> to vector<16x16x4xf32>
    %59 = vector.shape_cast %58 : vector<16x16x4xf32> to vector<256x4xf32>
    %c8 = arith.constant 8 : index
    %c0_60 = arith.constant 0 : index
    %c0_61 = arith.constant 0 : index
    %60 = vector.load %arg2[%c8, %c0_60, %c0_61] : memref<9x4x8xf32, #tpu.memory_space<vmem>>, vector<1x4x8xf32>
    %61 = vector.shape_cast %60 : vector<1x4x8xf32> to vector<4x8xf32>
    %cst_62 = arith.constant dense<0.000000e+00> : vector<256x8xf32>
    %62 = tpu.matmul %59, %61, %cst_62 {dimension_numbers = #tpu.dot_dimension_numbers<[1], [0], [0], [1], [0, 0, 1, 1], [], []>} : vector<256x4xf32>, vector<4x8xf32>, vector<256x8xf32> -> vector<256x8xf32>
    %63 = arith.addf %56, %62 : vector<256x8xf32>
    %64 = vector.shape_cast %63 : vector<256x8xf32> to vector<16x16x8xf32>
    %c0_63 = arith.constant 0 : index
    %c0_64 = arith.constant 0 : index
    %c0_65 = arith.constant 0 : index
    %c0_66 = arith.constant 0 : index
    %65 = vector.load %arg3[%c0_63, %c0_64, %c0_65, %c0_66] : memref<1x16x16x8xf32, #tpu.memory_space<vmem>>, vector<1x16x16x8xf32>
    %66 = vector.shape_cast %65 : vector<1x16x16x8xf32> to vector<16x16x8xf32>
    %67 = vector.shape_cast %64 : vector<16x16x8xf32> to vector<1x16x16x8xf32>
    tpu.vector_store %arg3[%c0_63, %c0_64, %c0_65, %c0_66], %67 {strides = array<i32>} : memref<1x16x16x8xf32, #tpu.memory_space<vmem>>, vector<1x16x16x8xf32>,
    %c0_i32 = arith.constant 0 : i32
    %68 = arith.cmpi eq, %arg0, %c0_i32 : i32
    %69 = arith.extui %68 : i1 to i32
    %c0_i32_67 = arith.constant 0 : i32
    %70 = arith.cmpi ne, %69, %c0_i32_67 : i32
    scf.if %70 {
      %cst_78 = arith.constant 0.000000e+00 : f32
      %82 = vector.broadcast %cst_78 : f32 to vector<1x8xf32>
      %c0_79 = arith.constant 0 : index
      %c0_80 = arith.constant 0 : index
      %83 = vector.load %arg4[%c0_79, %c0_80] : memref<1x8xf32, #tpu.memory_space<vmem>>, vector<1x8xf32>
      tpu.vector_store %arg4[%c0_79, %c0_80], %82 {strides = array<i32>} : memref<1x8xf32, #tpu.memory_space<vmem>>, vector<1x8xf32>,
      %cst_81 = arith.constant 0.000000e+00 : f32
      %84 = vector.broadcast %cst_81 : f32 to vector<1x8xf32>
      %c0_82 = arith.constant 0 : index
      %c0_83 = arith.constant 0 : index
      %85 = vector.load %arg5[%c0_82, %c0_83] : memref<1x8xf32, #tpu.memory_space<vmem>>, vector<1x8xf32>
      tpu.vector_store %arg5[%c0_82, %c0_83], %84 {strides = array<i32>} : memref<1x8xf32, #tpu.memory_space<vmem>>, vector<1x8xf32>,
    } else {
    }
    %c0_68 = arith.constant 0 : index
    %c0_69 = arith.constant 0 : index
    %71 = vector.load %arg4[%c0_68, %c0_69] : memref<1x8xf32, #tpu.memory_space<vmem>>, vector<1x8xf32>
    %cst_70 = arith.constant dense<0.000000e+00> : vector<8xf32>
    %72 = vector.multi_reduction <add>, %63, %cst_70 [0] : vector<256x8xf32> to vector<8xf32>
    %73 = vector.shape_cast %72 : vector<8xf32> to vector<1x8xf32>
    %74 = arith.addf %71, %73 : vector<1x8xf32>
    %c0_71 = arith.constant 0 : index
    %c0_72 = arith.constant 0 : index
    %75 = vector.load %arg4[%c0_71, %c0_72] : memref<1x8xf32, #tpu.memory_space<vmem>>, vector<1x8xf32>
    tpu.vector_store %arg4[%c0_71, %c0_72], %74 {strides = array<i32>} : memref<1x8xf32, #tpu.memory_space<vmem>>, vector<1x8xf32>,
    %c0_73 = arith.constant 0 : index
    %c0_74 = arith.constant 0 : index
    %76 = vector.load %arg5[%c0_73, %c0_74] : memref<1x8xf32, #tpu.memory_space<vmem>>, vector<1x8xf32>
    %77 = arith.mulf %63, %63 : vector<256x8xf32>
    %cst_75 = arith.constant dense<0.000000e+00> : vector<8xf32>
    %78 = vector.multi_reduction <add>, %77, %cst_75 [0] : vector<256x8xf32> to vector<8xf32>
    %79 = vector.shape_cast %78 : vector<8xf32> to vector<1x8xf32>
    %80 = arith.addf %76, %79 : vector<1x8xf32>
    %c0_76 = arith.constant 0 : index
    %c0_77 = arith.constant 0 : index
    %81 = vector.load %arg5[%c0_76, %c0_77] : memref<1x8xf32, #tpu.memory_space<vmem>>, vector<1x8xf32>
    tpu.vector_store %arg5[%c0_76, %c0_77], %80 {strides = array<i32>} : memref<1x8xf32, #tpu.memory_space<vmem>>, vector<1x8xf32>,
    return
  }
  func.func @transform_0(%arg0: i32) -> (i32, i32, i32, i32) {
    %c0_i32 = arith.constant 0 : i32
    %c0_i32_0 = arith.constant 0 : i32
    %c0_i32_1 = arith.constant 0 : i32
    %c0_i32_2 = arith.constant 0 : i32
    return %arg0, %c0_i32, %c0_i32_0, %c0_i32_1 : i32, i32, i32, i32
  }
  func.func @transform_1(%arg0: i32) -> (i32, i32, i32) {
    %c0_i32 = arith.constant 0 : i32
    %c0_i32_0 = arith.constant 0 : i32
    %c0_i32_1 = arith.constant 0 : i32
    %c0_i32_2 = arith.constant 0 : i32
    return %c0_i32, %c0_i32_0, %c0_i32_1 : i32, i32, i32
  }
  func.func @transform_2(%arg0: i32) -> (i32, i32, i32, i32) {
    %c0_i32 = arith.constant 0 : i32
    %c0_i32_0 = arith.constant 0 : i32
    %c0_i32_1 = arith.constant 0 : i32
    %c0_i32_2 = arith.constant 0 : i32
    return %arg0, %c0_i32, %c0_i32_0, %c0_i32_1 : i32, i32, i32, i32
  }
  func.func @transform_3(%arg0: i32) -> (i32, i32) {
    %c0_i32 = arith.constant 0 : i32
    %c0_i32_0 = arith.constant 0 : i32
    %c0_i32_1 = arith.constant 0 : i32
    return %c0_i32, %c0_i32_0 : i32, i32
  }
  func.func @transform_4(%arg0: i32) -> (i32, i32) {
    %c0_i32 = arith.constant 0 : i32
    %c0_i32_0 = arith.constant 0 : i32
    %c0_i32_1 = arith.constant 0 : i32
    return %c0_i32, %c0_i32_0 : i32, i32
  }
}

</mosaic_0001>

<bundles_post_ra>
// kernel: tpu_custom_call.1
= control target key start
LH: loop header
LB: loop body
LE: loop exit
PB: predicated region body
PF: predicated region fallthrough
CT: control target
= control target key end

     0   :  { %10 = vsyncpa [#allocation3], 0  ;;  %s5040_s0 = inlined_call_operand.vmem [shape: f32[2,18,18,4], index: 0, kind: input, shape index: {}]   ;;  %s5041_s1 = inlined_call_operand.vmem [shape: f32[9,4,8], index: 1, kind: input, shape index: {}]   ;;  %s5042_s2 = inlined_call_operand.vmem [shape: f32[2,16,16,8], index: 2, kind: output, shape index: {0}]   ;;  %s5043_s3 = inlined_call_operand.hbm [shape: f32[1,8], index: 3, kind: output, shape index: {1}]   ;;  %s5044_s4 = inlined_call_operand.hbm [shape: f32[1,8], index: 4, kind: output, shape index: {2}]  }
   0x1   :  { %11 = vsyncpa [#allocation5], 0  ;;  %s3598_s15 = smov 0  }
   0x2 LB: > { %s3604_s16 = sadd.s32 4294967295, %s3568_s15   ;;  %p2962_p0 = scmp.ge.s32.totalorder %s3568_s15, 1  ;;  %s3568_s15 = sphi %s3598_s15, %s17_s15  }
   0x3   : > { %p159_p1 = scmp.lt.s32.totalorder %s3568_s15, 3 }
   0x5   : > { %p160_p2 = pnand %p2962_p0, %p159_p1 }
   0x7   : > { %163 = sbr.rel (%p160_p2) target bundleno = 818 (0x332), region = 28 }
   0xc   : > { %v2966_v0 = vld [vmem:[%s5041_s1 + $0x4] sm:$0xf]  ;;  %vm359_vm0 = vcmask 1043456   ;;  %p185_p3 = scmp.lt.s32.totalorder %s3604_s16, 1  ;;  %v3033_v1 = vld [vmem:[%s5041_s1 + $0x8] sm:$0xf] }
   0xd   : > { %3471 = vmatpush.msk.msra.mxu1 %vm359_vm0, %v2966_v0  ;;  %3472 = vmatpush.msk.msra.mxu2 %vm359_vm0, %v2966_v0  ;;  %v3099_v2 = vld [vmem:[%s5041_s1 + $0xc] sm:$0xf]  ;;  %v227_v3 = vld [vmem:[%s5041_s1] sm:$0xf]  ;;  %v3165_v4 = vld [vmem:[%s5041_s1 + $0x10] sm:$0xf] }
   0xe   : > { %s3624_s25 = scalar_select %p185_p3, %s3604_s16, 1  ;;  %3473 = vmatpush.msk.msra.mxu3 %vm359_vm0, %v2966_v0  ;;  %2967 = vmatpush.msk.msra.mxu0 %vm359_vm0, %v2966_v0  ;;  %vm262_vm1 = vcmask 31744   ;;  %v3297_v25 = vld [vmem:[%s5041_s1 + $0x18] sm:$0xf]  ;;  %v3363_v26 = vld [vmem:[%s5041_s1 + $0x1c] sm:$0xf] }
   0xf   : > { %3034 = vmatpush.msk.msrb.mxu2 %vm359_vm0, %v3033_v1  ;;  %3000 = vmatpush.msk.msrb.mxu1 %vm359_vm0, %v227_v3  ;;  %v3231_v27 = vld [vmem:[%s5041_s1 + $0x14] sm:$0xf]  ;;  %v3429_v32 = vld [vmem:[%s5041_s1 + $0x20] sm:$0xf]  ;;  %vm2636_vm2 = vcmask 64512   ;;  %p3463_p4 = scmp.ne.s32.totalorder %s3604_s16, 0 }
  0x10   : > { %3100 = vmatpush.msk.msrb.mxu3 %vm359_vm0, %v3099_v2  ;;  %s3474_s28 = smul.u32 432, %s3624_s25  ;;  %3166 = vmatpush.msk.msrb.mxu0 %vm359_vm0, %v3165_v4  ;;  %s3470_s14 = sshll.u32 %s3624_s25, 8 }
  0x11   : > { %s4545_s19 = scalar_lea.vmem %s5042_s2, %s3470_s14 }
  0x12   : > { %s3639_s5 = scalar_lea.vmem %s5040_s0, %s3474_s28 }
  0x13   : > { %v3642_v5 = vld [vmem:[%s3639_s5 + $0x61] sm:$0xff]  ;;  %v3659_v9 = vld [vmem:[%s3639_s5 + $0x69] sm:$0xff]  ;;  %v3676_v13 = vld [vmem:[%s3639_s5 + $0x79] sm:$0xff] }
  0x14   : > { %v3645_v6 = vld [vmem:[%s3639_s5 + $0xc1] sm:$0xff]  ;;  %2976 = vmatmul.msk.f32.vlgmr.msra.gmra.mxu1 %vm262_vm1, %v3642_v5  ;;  %v3662_v10 = vld [vmem:[%s3639_s5 + $0xc9] sm:$0xff]  ;;  %v3679_v14 = vld [vmem:[%s3639_s5 + $0xd9] sm:$0xff] }
  0x15   : > { %v3648_v7 = vld [vmem:[%s3639_s5 + $0x121] sm:$0xff]  ;;  %2984 = vmatmul.msk.f32.vlgmr.msra.gmra.mxu2 %vm262_vm1, %v3645_v6  ;;  %v3665_v11 = vld [vmem:[%s3639_s5 + $0x129] sm:$0xff]  ;;  %v3682_v15 = vld [vmem:[%s3639_s5 + $0x139] sm:$0xff]  ;;  %3232 = vmatpush.msk.msra.mxu1 %vm359_vm0, %v3231_v27 }
  0x16   : > { %v228_v8 = vld [vmem:[%s3639_s5 + $0x1] sm:$0xff]  ;;  %2992 = vmatmul.msk.f32.vlgmr.msra.gmra.mxu3 %vm262_vm1, %v3648_v7  ;;  %v229_v12 = vld [vmem:[%s3639_s5 + $0x9] sm:$0xff]  ;;  %v230_v16 = vld [vmem:[%s3639_s5 + $0x19] sm:$0xff]  ;;  %3298 = vmatpush.msk.msra.mxu2 %vm359_vm0, %v3297_v25 }
  0x17   : > { %2968 = vmatmul.msk.f32.vlgmr.msra.gmra.mxu0 %vm262_vm1, %v228_v8  ;;  %v3693_v17 = vld [vmem:[%s3639_s5 + $0x81] sm:$0xff]  ;;  %v3710_v21 = vld [vmem:[%s3639_s5 + $0x91] sm:$0xff]  ;;  %3364 = vmatpush.msk.msra.mxu3 %vm359_vm0, %v3363_v26  ;;  %v3742_v28 = vld [vmem:[%s3639_s5 + $0x99] sm:$0xff] }
  0x18   : > { %v3696_v18 = vld [vmem:[%s3639_s5 + $0xe1] sm:$0xff]  ;;  %v3713_v22 = vld [vmem:[%s3639_s5 + $0xf1] sm:$0xff]  ;;  %v3745_v29 = vld [vmem:[%s3639_s5 + $0xf9] sm:$0xff]  ;;  %3430 = vmatpush.msk.msra.mxu0 %vm359_vm0, %v3429_v32 }
  0x19   : > { %v3699_v19 = vld [vmem:[%s3639_s5 + $0x141] sm:$0xff]  ;;  %v3716_v23 = vld [vmem:[%s3639_s5 + $0x151] sm:$0xff]  ;;  %v3748_v30 = vld [vmem:[%s3639_s5 + $0x159] sm:$0xff] }
  0x1a   : > { %v231_v20 = vld [vmem:[%s3639_s5 + $0x21] sm:$0xff]  ;;  %v3719_v24 = vld [vmem:[%s3639_s5 + $0x31] sm:$0xff]  ;;  %v3751_v31 = vld [vmem:[%s3639_s5 + $0x39] sm:$0xff] }
  0x1b   : > { %v3766_v33 = vld [vmem:[%s3639_s5 + $0xa9] sm:$0xff]  ;;  %v3786_v37 = vld [vmem:[%s3639_s5 + $0xb1] sm:$0xff]  ;;  %v195_v41 = vld [vmem:[%s3639_s5] sm:$0xff] }
  0x1c   : > { %2977 = vmatmul.msk.f32.gmra.mxu1 %vm262_vm1, %v3659_v9  ;;  %v3769_v34 = vld [vmem:[%s3639_s5 + $0x109] sm:$0xff]  ;;  %v3789_v38 = vld [vmem:[%s3639_s5 + $0x111] sm:$0xff]  ;;  %v3068_v46 = vld [vmem:[%s3639_s5 + $0x20] sm:$0xff] }
  0x1d   : > { %2985 = vmatmul.msk.f32.gmra.mxu2 %vm262_vm1, %v3662_v10  ;;  %v3772_v35 = vld [vmem:[%s3639_s5 + $0x169] sm:$0xff]  ;;  %v3792_v39 = vld [vmem:[%s3639_s5 + $0x171] sm:$0xff]  ;;  %v3820_v47 = vld [vmem:[%s3639_s5 + $0x1a] sm:$0xff] }
  0x1e   : > { %2993 = vmatmul.msk.f32.gmra.mxu3 %vm262_vm1, %v3665_v11  ;;  %v3775_v36 = vld [vmem:[%s3639_s5 + $0x49] sm:$0xff]  ;;  %v3795_v40 = vld [vmem:[%s3639_s5 + $0x51] sm:$0xff]  ;;  %v3860_v53 = vld [vmem:[%s3639_s5 + $0x3a] sm:$0xff] }
  0x1f   : > { %2969 = vmatmul.msk.f32.gmra.mxu0 %vm262_vm1, %v229_v12  ;;  %v688_v42 = vld [vmem:[%s3639_s5 + $0x2] sm:$0xff]  ;;  %v3067_v43 = vld [vmem:[%s3639_s5 + $0x18] sm:$0xff]  ;;  %v689_v45 = vld [vmem:[%s3639_s5 + $0xa] sm:$0xff] }
  0x20   : > { %v196_v44 = vld [vmem:[%s3639_s5 + $0x8] sm:$0xff]  ;;  %v3823_v48 = vld [vmem:[%s3639_s5 + $0x30] sm:$0xff]  ;;  %v3836_v50 = vld [vmem:[%s3639_s5 + $0x38] sm:$0xff] }
  0x21   : > { %v3833_v49 = vld [vmem:[%s3639_s5 + $0x22] sm:$0xff]  ;;  %v3846_v51 = vld [vmem:[%s3639_s5 + $0x32] sm:$0xff]  ;;  %v3874_v55 = vld [vmem:[%s3639_s5 + $0x4a] sm:$0xff] }
  0x22   : > { %v3849_v52 = vld [vmem:[%s3639_s5 + $0x48] sm:$0xff]  ;;  %v3863_v54 = vld [vmem:[%s3639_s5 + $0x50] sm:$0xff]  ;;  %v3877_v56 = vld [vmem:[%s3639_s5 + $0x60] sm:$0xff] }
  0x23   : > { %v3888_v57 = vld [vmem:[%s3639_s5 + $0x52] sm:$0xff]  ;;  %v3891_v58 = vld [vmem:[%s3639_s5 + $0x68] sm:$0xff]  ;;  %v3929_v3 = vld [vmem:[%s3639_s5 + $0x80] sm:$0xff] }
  0x24   : > { %2978 = vmatmul.msk.f32.gmra.mxu1 %vm262_vm1, %v3676_v13  ;;  %5073 = vst [vmem:[#allocation8_spill] sm:$0xff] %v3891_v58  ;;  %v3904_v60 = vld [vmem:[%s3639_s5 + $0x62] sm:$0xff]  ;;  %v3907_v61 = vld [vmem:[%s3639_s5 + $0x78] sm:$0xff]  ;;  %v3926_v2 = vld [vmem:[%s3639_s5 + $0x6a] sm:$0xff] }
  0x25   : > { %2986 = vmatmul.msk.f32.gmra.mxu2 %vm262_vm1, %v3679_v14  ;;  %5074 = vst [vmem:[#allocation9_spill] sm:$0xff] %v3907_v61  ;;  %v3948_v12 = vld [vmem:[%s3639_s5 + $0x7a] sm:$0xff]  ;;  %v3970_v26 = vld [vmem:[%s3639_s5 + $0x82] sm:$0xff] }
  0x26   : > { %2994 = vmatmul.msk.f32.gmra.mxu3 %vm262_vm1, %v3682_v15  ;;  %5076 = vst [vmem:[#allocation11_spill] sm:$0xff] %v3926_v2  ;;  %v3973_v27 = vld [vmem:[%s3639_s5 + $0x98] sm:$0xff] }
  0x27   : > { %2970 = vmatmul.msk.f32.gmra.mxu0 %vm262_vm1, %v230_v16  ;;  %5077 = vst [vmem:[#allocation12_spill] sm:$0xff] %v3929_v3 }
  0x28   : > { %5079 = vst [vmem:[#allocation14_spill] sm:$0xff] %v3948_v12 }
  0x29   : > { %5082 = vst [vmem:[#allocation17_spill] sm:$0xff] %v3970_v26 }
  0x2a   : > { %5083 = vst [vmem:[#allocation18_spill] sm:$0xff] %v3973_v27 }
  0x2c   : > { %2979 = vmatmul.msk.f32.gmra.mxu1 %vm262_vm1, %v3693_v17 }
  0x2d   : > { %2987 = vmatmul.msk.f32.gmra.mxu2 %vm262_vm1, %v3696_v18 }
  0x2e   : > { %2995 = vmatmul.msk.f32.gmra.mxu3 %vm262_vm1, %v3699_v19 }
  0x2f   : > { %2971 = vmatmul.msk.f32.gmra.mxu0 %vm262_vm1, %v231_v20 }
  0x34   : > { %2980 = vmatmul.msk.f32.gmra.mxu1 %vm262_vm1, %v3710_v21 }
  0x35   : > { %2988 = vmatmul.msk.f32.gmra.mxu2 %vm262_vm1, %v3713_v22 }
  0x36   : > { %2996 = vmatmul.msk.f32.gmra.mxu3 %vm262_vm1, %v3716_v23 }
  0x37   : > { %2972 = vmatmul.msk.f32.gmra.mxu0 %vm262_vm1, %v3719_v24 }
  0x3c   : > { %2981 = vmatmul.msk.f32.gmra.mxu1 %vm262_vm1, %v3742_v28 }
  0x3d   : > { %2989 = vmatmul.msk.f32.gmra.mxu2 %vm262_vm1, %v3745_v29 }
  0x3e   : > { %2997 = vmatmul.msk.f32.gmra.mxu3 %vm262_vm1, %v3748_v30 }
  0x3f   : > { %2973 = vmatmul.msk.f32.gmra.mxu0 %vm262_vm1, %v3751_v31 }
  0x44   : > { %2982 = vmatmul.msk.f32.gmra.mxu1 %vm262_vm1, %v3766_v33 }
  0x45   : > { %2990 = vmatmul.msk.f32.gmra.mxu2 %vm262_vm1, %v3769_v34 }
  0x46   : > { %2998 = vmatmul.msk.f32.gmra.mxu3 %vm262_vm1, %v3772_v35 }
  0x47   : > { %2974 = vmatmul.msk.f32.gmra.mxu0 %vm262_vm1, %v3775_v36 }
  0x4c   : > { %2983 = vmatmul.msk.f32.gmra.mxu1 %vm262_vm1, %v3786_v37 }
  0x4d   : > { %2991 = vmatmul.msk.f32.gmra.mxu2 %vm262_vm1, %v3789_v38 }
  0x4e   : > { %2999 = vmatmul.msk.f32.gmra.mxu3 %vm262_vm1, %v3792_v39 }
  0x4f   : > { %2975 = vmatmul.msk.f32.gmra.mxu0 %vm262_vm1, %v3795_v40 }
  0x54   : > { %3001 = vmatmul.msk.f32.vlgmr.msrb.gmra.mxu1 %vm262_vm1, %v195_v41 }
  0x55   : > { %3035 = vmatmul.msk.f32.vlgmr.msrb.gmra.mxu2 %vm262_vm1, %v688_v42 }
  0x56   : > { %3101 = vmatmul.msk.f32.vlgmr.msrb.gmra.mxu3 %vm262_vm1, %v3067_v43 }
  0x57   : > { %3167 = vmatmul.msk.f32.vlgmr.msrb.gmra.mxu0 %vm262_vm1, %v230_v16 }
  0x5c   : > { %3002 = vmatmul.msk.f32.gmra.mxu1 %vm262_vm1, %v196_v44  ;;  %v3995_v44 = vld [vmem:[%s3639_s5 + $0xa8] sm:$0xff] }
  0x5d   : > { %3036 = vmatmul.msk.f32.gmra.mxu2 %vm262_vm1, %v689_v45  ;;  %5086 = vst [vmem:[#allocation21_spill] sm:$0xff] %v3995_v44 }
  0x5e   : > { %3102 = vmatmul.msk.f32.gmra.mxu3 %vm262_vm1, %v3068_v46 }
  0x5f   : > { %3168 = vmatmul.msk.f32.gmra.mxu0 %vm262_vm1, %v231_v20 }
  0x64   : > { %3003 = vmatmul.msk.f32.gmra.mxu1 %vm262_vm1, %v3067_v43  ;;  %v3992_v43 = vld [vmem:[%s3639_s5 + $0x92] sm:$0xff] }
  0x65   : > { %3037 = vmatmul.msk.f32.gmra.mxu2 %vm262_vm1, %v3820_v47  ;;  %5085 = vst [vmem:[#allocation20_spill] sm:$0xff] %v3992_v43 }
  0x66   : > { %3103 = vmatmul.msk.f32.gmra.mxu3 %vm262_vm1, %v3823_v48 }
  0x67   : > { %3169 = vmatmul.msk.f32.gmra.mxu0 %vm262_vm1, %v3719_v24 }
  0x6c   : > { %3004 = vmatmul.msk.f32.gmra.mxu1 %vm262_vm1, %v3068_v46 }
  0x6d   : > { %3038 = vmatmul.msk.f32.gmra.mxu2 %vm262_vm1, %v3833_v49 }
  0x6e   : > { %3104 = vmatmul.msk.f32.gmra.mxu3 %vm262_vm1, %v3836_v50 }
  0x6f   : > { %3170 = vmatmul.msk.f32.gmra.mxu0 %vm262_vm1, %v3751_v31 }
  0x74   : > { %3005 = vmatmul.msk.f32.gmra.mxu1 %vm262_vm1, %v3823_v48 }
  0x75   : > { %3039 = vmatmul.msk.f32.gmra.mxu2 %vm262_vm1, %v3846_v51 }
  0x76   : > { %3105 = vmatmul.msk.f32.gmra.mxu3 %vm262_vm1, %v3849_v52 }
  0x77   : > { %3171 = vmatmul.msk.f32.gmra.mxu0 %vm262_vm1, %v3775_v36 }
  0x7c   : > { %3006 = vmatmul.msk.f32.gmra.mxu1 %vm262_vm1, %v3836_v50 }
  0x7d   : > { %3040 = vmatmul.msk.f32.gmra.mxu2 %vm262_vm1, %v3860_v53 }
  0x7e   : > { %3106 = vmatmul.msk.f32.gmra.mxu3 %vm262_vm1, %v3863_v54 }
  0x7f   : > { %3172 = vmatmul.msk.f32.gmra.mxu0 %vm262_vm1, %v3795_v40 }
  0x84   : > { %3007 = vmatmul.msk.f32.gmra.mxu1 %vm262_vm1, %v3849_v52 }
  0x85   : > { %3041 = vmatmul.msk.f32.gmra.mxu2 %vm262_vm1, %v3874_v55 }
  0x86   : > { %3107 = vmatmul.msk.f32.gmra.mxu3 %vm262_vm1, %v3877_v56 }
  0x87   : > { %3173 = vmatmul.msk.f32.gmra.mxu0 %vm262_vm1, %v3642_v5 }
  0x8c   : > { %3008 = vmatmul.msk.f32.gmra.mxu1 %vm262_vm1, %v3863_v54 }
  0x8d   : > { %3042 = vmatmul.msk.f32.gmra.mxu2 %vm262_vm1, %v3888_v57 }
  0x8e   : > { %3108 = vmatmul.msk.f32.gmra.mxu3 %vm262_vm1, %v3891_v58 }
  0x8f   : > { %3174 = vmatmul.msk.f32.gmra.mxu0 %vm262_vm1, %v3659_v9 }
  0x91   : > { %v3901_v59 = vpop.f32.mrf.mxu1 }
  0x94   : > { %v3909_v62 = vpop.f32.mrf.mxu0  ;;  %3009 = vmatmul.msk.f32.gmra.mxu1 %vm262_vm1, %v3877_v56 }
  0x95   : > { %3043 = vmatmul.msk.f32.gmra.mxu2 %vm262_vm1, %v3904_v60 }
  0x96   : > { %3109 = vmatmul.msk.f32.gmra.mxu3 %vm262_vm1, %v3907_v61 }
  0x97   : > { %3175 = vmatmul.msk.f32.gmra.mxu0 %vm262_vm1, %v3676_v13  ;;  %v3951_v13 = vld [vmem:[%s3639_s5 + $0x90] sm:$0xff] }
  0x98   : > { %v3919_v63 = vpop.f32.mrf.mxu2  ;;  %5080 = vst [vmem:[#allocation15_spill] sm:$0xff] %v3951_v13 }
  0x99   : > { %v3921_v0 = vpop.f32.mrf.mxu3  ;;  %v3923_v1 = vpop.f32.mrf.mxu1 }
  0x9a   : > { %5075 = vst [vmem:[#allocation10_spill] sm:$0xff] %v3921_v0 }
  0x9c   : > { %v3931_v4 = vpop.f32.mrf.mxu0  ;;  %3010 = vmatmul.msk.f32.gmra.mxu1 %vm262_vm1, %v3891_v58  ;;  %v4096_v58 = vld [vmem:[%s3639_s5 + $0xe0] sm:$0xff] }
  0x9d   : > { %3044 = vmatmul.msk.f32.gmra.mxu2 %vm262_vm1, %v3926_v2  ;;  %v4093_v2 = vld [vmem:[%s3639_s5 + $0xca] sm:$0xff] }
  0x9e   : > { %3110 = vmatmul.msk.f32.gmra.mxu3 %vm262_vm1, %v3929_v3 }
  0x9f   : > { %3176 = vmatmul.msk.f32.gmra.mxu0 %vm262_vm1, %v3693_v17 }
  0xa0   : > { %v3941_v5 = vpop.f32.mrf.mxu2 }
  0xa1   : > { %v3943_v8 = vpop.f32.mrf.mxu3  ;;  %v3945_v9 = vpop.f32.mrf.mxu1 }
  0xa2   : > { %5078 = vst [vmem:[#allocation13_spill] sm:$0xff] %v3943_v8  ;;  %v4017_v8 = vld [vmem:[%s3639_s5 + $0xb0] sm:$0xff] }
  0xa3   : > { %5090 = vst [vmem:[#allocation25_spill] sm:$0xff] %v4017_v8 }
  0xa4   : > { %v3953_v16 = vpop.f32.mrf.mxu0  ;;  %3011 = vmatmul.msk.f32.gmra.mxu1 %vm262_vm1, %v3907_v61  ;;  %v4081_v61 = vld [vmem:[%s3639_s5 + $0xd8] sm:$0xff] }
  0xa5   : > { %3045 = vmatmul.msk.f32.gmra.mxu2 %vm262_vm1, %v3948_v12 }
  0xa6   : > { %3111 = vmatmul.msk.f32.gmra.mxu3 %vm262_vm1, %v3951_v13 }
  0xa7   : > { %3177 = vmatmul.msk.f32.gmra.mxu0 %vm262_vm1, %v3710_v21 }
  0xa8   : > { %v3963_v17 = vpop.f32.mrf.mxu2 }
  0xa9   : > { %v3965_v20 = vpop.f32.mrf.mxu3  ;;  %v3967_v25 = vpop.f32.mrf.mxu1 }
  0xaa   : > { %5081 = vst [vmem:[#allocation16_spill] sm:$0xff] %v3965_v20  ;;  %v4014_v20 = vld [vmem:[%s3639_s5 + $0x9a] sm:$0xff] }
  0xab   : > { %5089 = vst [vmem:[#allocation24_spill] sm:$0xff] %v4014_v20 }
  0xac   : > { %v3975_v32 = vpop.f32.mrf.mxu0  ;;  %3012 = vmatmul.msk.f32.gmra.mxu1 %vm262_vm1, %v3929_v3  ;;  %v4058_v3 = vld [vmem:[%s3639_s5 + $0xb2] sm:$0xff] }
  0xad   : > { %3046 = vmatmul.msk.f32.gmra.mxu2 %vm262_vm1, %v3970_v26  ;;  %5097 = vst [vmem:[#allocation32_spill] sm:$0xff] %v4058_v3 }
  0xae   : > { %3112 = vmatmul.msk.f32.gmra.mxu3 %vm262_vm1, %v3973_v27 }
  0xaf   : > { %3178 = vmatmul.msk.f32.gmra.mxu0 %vm262_vm1, %v3742_v28 }
  0xb0   : > { %v3985_v21 = vpop.f32.mrf.mxu2 }
  0xb1   : > { %v3987_v41 = vpop.f32.mrf.mxu3  ;;  %v3989_v42 = vpop.f32.mrf.mxu1 }
  0xb2   : > { %5084 = vst [vmem:[#allocation19_spill] sm:$0xff] %v3987_v41 }
  0xb4   : > { %v3997_v45 = vpop.f32.mrf.mxu0  ;;  %3013 = vmatmul.msk.f32.gmra.mxu1 %vm262_vm1, %v3951_v13  ;;  %v4036_v13 = vld [vmem:[%s3639_s5 + $0xaa] sm:$0xff] }
  0xb5   : > { %3047 = vmatmul.msk.f32.gmra.mxu2 %vm262_vm1, %v3992_v43  ;;  %5093 = vst [vmem:[#allocation28_spill] sm:$0xff] %v4036_v13 }
  0xb6   : > { %3113 = vmatmul.msk.f32.gmra.mxu3 %vm262_vm1, %v3995_v44 }
  0xb7   : > { %3179 = vmatmul.msk.f32.gmra.mxu0 %vm262_vm1, %v3766_v33 }
  0xb8   : > { %v4007_v28 = vpop.f32.mrf.mxu2 }
  0xb9   : > { %5087 = vst [vmem:[#allocation22_spill] sm:$0xff] %v4007_v28  ;;  %v4009_v46 = vpop.f32.mrf.mxu3  ;;  %v4011_v41 = vpop.f32.mrf.mxu1 }
  0xba   : > { %5088 = vst [vmem:[#allocation23_spill] sm:$0xff] %v4009_v46 }
  0xbc   : > { %v4019_v0 = vpop.f32.mrf.mxu0  ;;  %3014 = vmatmul.msk.f32.gmra.mxu1 %vm262_vm1, %v3973_v27  ;;  %v4039_v27 = vld [vmem:[%s3639_s5 + $0xc0] sm:$0xff] }
  0xbd   : > { %3048 = vmatmul.msk.f32.gmra.mxu2 %vm262_vm1, %v4014_v20  ;;  %5094 = vst [vmem:[#allocation29_spill] sm:$0xff] %v4039_v27 }
  0xbe   : > { %3114 = vmatmul.msk.f32.gmra.mxu3 %vm262_vm1, %v4017_v8 }
  0xbf   : > { %3180 = vmatmul.msk.f32.gmra.mxu0 %vm262_vm1, %v3786_v37 }
  0xc0   : > { %v4029_v33 = vpop.f32.mrf.mxu2 }
  0xc1   : > { %5091 = vst [vmem:[#allocation26_spill] sm:$0xff] %v4029_v33  ;;  %v4031_v46 = vpop.f32.mrf.mxu3  ;;  %v4033_v43 = vpop.f32.mrf.mxu1 }
  0xc2   : > { %5092 = vst [vmem:[#allocation27_spill] sm:$0xff] %v4031_v46 }
  0xc4   : > { %v4041_v26 = vpop.f32.mrf.mxu0  ;;  %3015 = vmatmul.msk.f32.gmra.mxu1 %vm262_vm1, %v3995_v44  ;;  %v4061_v44 = vld [vmem:[%s3639_s5 + $0xc8] sm:$0xff] }
  0xc5   : > { %3049 = vmatmul.msk.f32.gmra.mxu2 %vm262_vm1, %v4036_v13 }
  0xc6   : > { %3115 = vmatmul.msk.f32.gmra.mxu3 %vm262_vm1, %v4039_v27 }
  0xc7   : > { %3181 = vmatmul.msk.f32.gmra.mxu0 %vm262_vm1, %v3645_v6 }
  0xc8   : > { %v4051_v37 = vpop.f32.mrf.mxu2 }
  0xc9   : > { %5095 = vst [vmem:[#allocation30_spill] sm:$0xff] %v4051_v37  ;;  %v4053_v46 = vpop.f32.mrf.mxu3  ;;  %v4055_v20 = vpop.f32.mrf.mxu1  ;;  %v4078_v37 = vld [vmem:[%s3639_s5 + $0xc2] sm:$0xff] }
  0xca   : > { %5096 = vst [vmem:[#allocation31_spill] sm:$0xff] %v4053_v46 }
  0xcb   : > { %5100 = vst [vmem:[#allocation35_spill] sm:$0xff] %v4078_v37 }
  0xcc   : > { %v4063_v12 = vpop.f32.mrf.mxu0  ;;  %3016 = vmatmul.msk.f32.gmra.mxu1 %vm262_vm1, %v4017_v8 }
  0xcd   : > { %3050 = vmatmul.msk.f32.gmra.mxu2 %vm262_vm1, %v4058_v3 }
  0xce   : > { %3116 = vmatmul.msk.f32.gmra.mxu3 %vm262_vm1, %v4061_v44 }
  0xcf   : > { %3182 = vmatmul.msk.f32.gmra.mxu0 %vm262_vm1, %v3662_v10 }
  0xd0   : > { %v4073_v6 = vpop.f32.mrf.mxu2 }
  0xd1   : > { %5098 = vst [vmem:[#allocation33_spill] sm:$0xff] %v4073_v6  ;;  %v4075_v46 = vpop.f32.mrf.mxu3  ;;  %v592_v13 = vpop.f32.mrf.mxu1 }
  0xd2   : > { %5099 = vst [vmem:[#allocation34_spill] sm:$0xff] %v4075_v46  ;;  %v593_v10 = vadd.f32 %v592_v13, %v3909_v62 }
  0xd4   : > { %v1395_v8 = vpop.f32.mrf.mxu0  ;;  %3017 = vmatmul.msk.f32.gmra.mxu1 %vm262_vm1, %v4039_v27 }
  0xd5   : > { %3051 = vmatmul.msk.f32.gmra.mxu2 %vm262_vm1, %v4078_v37 }
  0xd6   : > { %3117 = vmatmul.msk.f32.gmra.mxu3 %vm262_vm1, %v4081_v61 }
  0xd7   : > { %3183 = vmatmul.msk.f32.gmra.mxu0 %vm262_vm1, %v3679_v14 }
  0xd8   : > { %v838_v46 = vpop.f32.mrf.mxu2 }
  0xd9   : > { %v934_v3 = vadd.f32 %v838_v46, %v593_v10  ;;  %v1117_v6 = vpop.f32.mrf.mxu3  ;;  %v595_v33 = vpop.f32.mrf.mxu1 }
  0xda   : > { %v596_v14 = vadd.f32 %v595_v33, %v3931_v4 }
  0xdb   : > { %v1213_v27 = vadd.f32 %v1117_v6, %v934_v3  ;;  %v4113_v6 = vld [vmem:[%s3639_s5 + $0xf0] sm:$0xff] }
  0xdc   : > { %v1398_v37 = vpop.f32.mrf.mxu0  ;;  %3018 = vmatmul.msk.f32.gmra.mxu1 %vm262_vm1, %v4061_v44 }
  0xdd   : > { %v4098_v28 = vadd.f32 %v1395_v8, %v1213_v27  ;;  %3052 = vmatmul.msk.f32.gmra.mxu2 %vm262_vm1, %v4093_v2  ;;  %v4110_v27 = vld [vmem:[%s3639_s5 + $0xda] sm:$0xff] }
  0xde   : > { %3118 = vmatmul.msk.f32.gmra.mxu3 %vm262_vm1, %v4096_v58 }
  0xdf   : > { %5101 = vst [vmem:[#allocation36_spill] sm:$0xff] %v4098_v28  ;;  %3184 = vmatmul.msk.f32.gmra.mxu0 %vm262_vm1, %v3696_v18 }
  0xe0   : > { %v841_v62 = vpop.f32.mrf.mxu2 }
  0xe1   : > { %v935_v3 = vadd.f32 %v841_v62, %v596_v14  ;;  %v1120_v13 = vpop.f32.mrf.mxu3  ;;  %v598_v8 = vpop.f32.mrf.mxu1  ;;  %v4127_v62 = vld [vmem:[%s3639_s5 + $0xe2] sm:$0xff] }
  0xe2   : > { %v599_v18 = vadd.f32 %v598_v8, %v3953_v16 }
  0xe3   : > { %v1214_v46 = vadd.f32 %v1120_v13, %v935_v3  ;;  %v4130_v13 = vld [vmem:[%s3639_s5 + $0xf8] sm:$0xff] }
  0xe4   : > { %v1401_v10 = vpop.f32.mrf.mxu0  ;;  %3019 = vmatmul.msk.f32.gmra.mxu1 %vm262_vm1, %v4081_v61 }
  0xe5   : > { %v4115_v28 = vadd.f32 %v1398_v37, %v1214_v46  ;;  %3053 = vmatmul.msk.f32.gmra.mxu2 %vm262_vm1, %v4110_v27 }
  0xe6   : > { %3119 = vmatmul.msk.f32.gmra.mxu3 %vm262_vm1, %v4113_v6 }
  0xe7   : > { %5102 = vst [vmem:[#allocation37_spill] sm:$0xff] %v4115_v28  ;;  %3185 = vmatmul.msk.f32.gmra.mxu0 %vm262_vm1, %v3713_v22 }
  0xe8   : > { %v844_v4 = vpop.f32.mrf.mxu2 }
  0xe9   : > { %v936_v33 = vadd.f32 %v844_v4, %v599_v18  ;;  %v1123_v14 = vpop.f32.mrf.mxu3  ;;  %v601_v37 = vpop.f32.mrf.mxu1  ;;  %v4144_v4 = vld [vmem:[%s3639_s5 + $0xf2] sm:$0xff] }
  0xea   : > { %v602_v22 = vadd.f32 %v601_v37, %v3975_v32 }
  0xeb   : > { %v1215_v3 = vadd.f32 %v1123_v14, %v936_v33  ;;  %v4147_v14 = vld [vmem:[%s3639_s5 + $0x108] sm:$0xff] }
  0xec   : > { %v1404_v46 = vpop.f32.mrf.mxu0  ;;  %3020 = vmatmul.msk.f32.gmra.mxu1 %vm262_vm1, %v4096_v58 }
  0xed   : > { %v4132_v28 = vadd.f32 %v1401_v10, %v1215_v3  ;;  %3054 = vmatmul.msk.f32.gmra.mxu2 %vm262_vm1, %v4127_v62 }
  0xee   : > { %3120 = vmatmul.msk.f32.gmra.mxu3 %vm262_vm1, %v4130_v13 }
  0xef   : > { %5103 = vst [vmem:[#allocation38_spill] sm:$0xff] %v4132_v28  ;;  %3186 = vmatmul.msk.f32.gmra.mxu0 %vm262_vm1, %v3745_v29 }
  0xf0   : > { %v847_v16 = vpop.f32.mrf.mxu2 }
  0xf1   : > { %v937_v8 = vadd.f32 %v847_v16, %v602_v22  ;;  %v1126_v18 = vpop.f32.mrf.mxu3  ;;  %v604_v10 = vpop.f32.mrf.mxu1  ;;  %v4161_v16 = vld [vmem:[%s3639_s5 + $0xfa] sm:$0xff] }
  0xf2   : > { %v605_v29 = vadd.f32 %v604_v10, %v3997_v45 }
  0xf3   : > { %v1216_v33 = vadd.f32 %v1126_v18, %v937_v8  ;;  %v4164_v18 = vld [vmem:[%s3639_s5 + $0x110] sm:$0xff] }
  0xf4   : > { %v1407_v3 = vpop.f32.mrf.mxu0  ;;  %3021 = vmatmul.msk.f32.gmra.mxu1 %vm262_vm1, %v4113_v6 }
  0xf5   : > { %v4149_v28 = vadd.f32 %v1404_v46, %v1216_v33  ;;  %3055 = vmatmul.msk.f32.gmra.mxu2 %vm262_vm1, %v4144_v4 }
  0xf6   : > { %3121 = vmatmul.msk.f32.gmra.mxu3 %vm262_vm1, %v4147_v14 }
  0xf7   : > { %5104 = vst [vmem:[#allocation39_spill] sm:$0xff] %v4149_v28  ;;  %3187 = vmatmul.msk.f32.gmra.mxu0 %vm262_vm1, %v3769_v34 }
  0xf8   : > { %v850_v32 = vpop.f32.mrf.mxu2 }
  0xf9   : > { %v938_v37 = vadd.f32 %v850_v32, %v605_v29  ;;  %v1129_v22 = vpop.f32.mrf.mxu3  ;;  %v607_v46 = vpop.f32.mrf.mxu1  ;;  %v4178_v32 = vld [vmem:[%s3639_s5 + $0x10a] sm:$0xff] }
  0xfa   : > { %v608_v34 = vadd.f32 %v607_v46, %v4019_v0 }
  0xfb   : > { %v1217_v8 = vadd.f32 %v1129_v22, %v938_v37  ;;  %v4181_v22 = vld [vmem:[%s3639_s5 + $0x120] sm:$0xff] }
  0xfc   : > { %v1410_v33 = vpop.f32.mrf.mxu0  ;;  %3022 = vmatmul.msk.f32.gmra.mxu1 %vm262_vm1, %v4130_v13 }
  0xfd   : > { %v4166_v28 = vadd.f32 %v1407_v3, %v1217_v8  ;;  %3056 = vmatmul.msk.f32.gmra.mxu2 %vm262_vm1, %v4161_v16 }
  0xfe   : > { %3122 = vmatmul.msk.f32.gmra.mxu3 %vm262_vm1, %v4164_v18 }
  0xff   : > { %5105 = vst [vmem:[#allocation40_spill] sm:$0xff] %v4166_v28  ;;  %3188 = vmatmul.msk.f32.gmra.mxu0 %vm262_vm1, %v3789_v38 }
 0x100   : > { %v853_v45 = vpop.f32.mrf.mxu2 }
 0x101   : > { %v939_v10 = vadd.f32 %v853_v45, %v608_v34  ;;  %v1132_v29 = vpop.f32.mrf.mxu3  ;;  %v610_v3 = vpop.f32.mrf.mxu1  ;;  %v4195_v45 = vld [vmem:[%s3639_s5 + $0x112] sm:$0xff] }
 0x102   : > { %v611_v38 = vadd.f32 %v610_v3, %v4041_v26 }
 0x103   : > { %v1218_v37 = vadd.f32 %v1132_v29, %v939_v10  ;;  %v4198_v29 = vld [vmem:[%s3639_s5 + $0x128] sm:$0xff] }
 0x104   : > { %v1413_v8 = vpop.f32.mrf.mxu0  ;;  %3023 = vmatmul.msk.f32.gmra.mxu1 %vm262_vm1, %v4147_v14 }
 0x105   : > { %v4183_v28 = vadd.f32 %v1410_v33, %v1218_v37  ;;  %3057 = vmatmul.msk.f32.gmra.mxu2 %vm262_vm1, %v4178_v32 }
 0x106   : > { %3123 = vmatmul.msk.f32.gmra.mxu3 %vm262_vm1, %v4181_v22 }
 0x107   : > { %5106 = vst [vmem:[#allocation41_spill] sm:$0xff] %v4183_v28  ;;  %3189 = vmatmul.msk.f32.gmra.mxu0 %vm262_vm1, %v3648_v7 }
 0x108   : > { %v856_v0 = vpop.f32.mrf.mxu2 }
 0x109   : > { %v940_v46 = vadd.f32 %v856_v0, %v611_v38  ;;  %v1135_v34 = vpop.f32.mrf.mxu3  ;;  %v613_v33 = vpop.f32.mrf.mxu1  ;;  %v4212_v0 = vld [vmem:[%s3639_s5 + $0x122] sm:$0xff] }
 0x10a   : > { %v614_v7 = vadd.f32 %v613_v33, %v4063_v12 }
 0x10b   : > { %v1219_v10 = vadd.f32 %v1135_v34, %v940_v46  ;;  %v4215_v34 = vld [vmem:[%s3639_s5 + $0x138] sm:$0xff] }
 0x10c   : > { %v1416_v37 = vpop.f32.mrf.mxu0  ;;  %3024 = vmatmul.msk.f32.gmra.mxu1 %vm262_vm1, %v4164_v18 }
 0x10d   : > { %v4200_v28 = vadd.f32 %v1413_v8, %v1219_v10  ;;  %3058 = vmatmul.msk.f32.gmra.mxu2 %vm262_vm1, %v4195_v45 }
 0x10e   : > { %3124 = vmatmul.msk.f32.gmra.mxu3 %vm262_vm1, %v4198_v29 }
 0x10f   : > { %5107 = vst [vmem:[#allocation42_spill] sm:$0xff] %v4200_v28  ;;  %3190 = vmatmul.msk.f32.gmra.mxu0 %vm262_vm1, %v3665_v11 }
 0x110   : > { %v859_v26 = vpop.f32.mrf.mxu2 }
 0x111   : > { %v941_v3 = vadd.f32 %v859_v26, %v614_v7  ;;  %v1138_v38 = vpop.f32.mrf.mxu3  ;;  %v616_v8 = vpop.f32.mrf.mxu1  ;;  %v4229_v26 = vld [vmem:[%s3639_s5 + $0x12a] sm:$0xff] }
 0x112   : > { %v617_v11 = vadd.f32 %v616_v8, %v3901_v59 }
 0x113   : > { %v1220_v46 = vadd.f32 %v1138_v38, %v941_v3  ;;  %v4232_v38 = vld [vmem:[%s3639_s5 + $0x140] sm:$0xff] }
 0x114   : > { %v1419_v10 = vpop.f32.mrf.mxu0  ;;  %3025 = vmatmul.msk.f32.gmra.mxu1 %vm262_vm1, %v4181_v22 }
 0x115   : > { %v4217_v28 = vadd.f32 %v1416_v37, %v1220_v46  ;;  %3059 = vmatmul.msk.f32.gmra.mxu2 %vm262_vm1, %v4212_v0 }
 0x116   : > { %3125 = vmatmul.msk.f32.gmra.mxu3 %vm262_vm1, %v4215_v34 }
 0x117   : > { %5108 = vst [vmem:[#allocation43_spill] sm:$0xff] %v4217_v28  ;;  %3191 = vmatmul.msk.f32.gmra.mxu0 %vm262_vm1, %v3682_v15 }
 0x118   : > { %v862_v12 = vpop.f32.mrf.mxu2 }
 0x119   : > { %v942_v33 = vadd.f32 %v862_v12, %v617_v11  ;;  %v1141_v7 = vpop.f32.mrf.mxu3  ;;  %v619_v37 = vpop.f32.mrf.mxu1  ;;  %v4246_v12 = vld [vmem:[%s3639_s5 + $0x13a] sm:$0xff] }
 0x11a   : > { %v620_v15 = vadd.f32 %v619_v37, %v3923_v1 }
 0x11b   : > { %v1221_v3 = vadd.f32 %v1141_v7, %v942_v33  ;;  %v4249_v7 = vld [vmem:[%s3639_s5 + $0x150] sm:$0xff] }
 0x11c   : > { %v1422_v46 = vpop.f32.mrf.mxu0  ;;  %3026 = vmatmul.msk.f32.gmra.mxu1 %vm262_vm1, %v4198_v29 }
 0x11d   : > { %v4234_v28 = vadd.f32 %v1419_v10, %v1221_v3  ;;  %3060 = vmatmul.msk.f32.gmra.mxu2 %vm262_vm1, %v4229_v26 }
 0x11e   : > { %3126 = vmatmul.msk.f32.gmra.mxu3 %vm262_vm1, %v4232_v38 }
 0x11f   : > { %5109 = vst [vmem:[#allocation44_spill] sm:$0xff] %v4234_v28  ;;  %3192 = vmatmul.msk.f32.gmra.mxu0 %vm262_vm1, %v3699_v19 }
 0x120   : > { %v865_v59 = vpop.f32.mrf.mxu2 }
 0x121   : > { %v943_v8 = vadd.f32 %v865_v59, %v620_v15  ;;  %v1144_v11 = vpop.f32.mrf.mxu3  ;;  %v622_v10 = vpop.f32.mrf.mxu1  ;;  %v4263_v59 = vld [vmem:[%s3639_s5 + $0x142] sm:$0xff] }
 0x122   : > { %v623_v19 = vadd.f32 %v622_v10, %v3945_v9 }
 0x123   : > { %v1222_v33 = vadd.f32 %v1144_v11, %v943_v8  ;;  %v4266_v11 = vld [vmem:[%s3639_s5 + $0x158] sm:$0xff] }
 0x124   : > { %v1425_v3 = vpop.f32.mrf.mxu0  ;;  %3027 = vmatmul.msk.f32.gmra.mxu1 %vm262_vm1, %v4215_v34 }
 0x125   : > { %v4251_v28 = vadd.f32 %v1422_v46, %v1222_v33  ;;  %3061 = vmatmul.msk.f32.gmra.mxu2 %vm262_vm1, %v4246_v12 }
 0x126   : > { %3127 = vmatmul.msk.f32.gmra.mxu3 %vm262_vm1, %v4249_v7 }
 0x127   : > { %5110 = vst [vmem:[#allocation45_spill] sm:$0xff] %v4251_v28  ;;  %3193 = vmatmul.msk.f32.gmra.mxu0 %vm262_vm1, %v3716_v23 }
 0x128   : > { %v868_v1 = vpop.f32.mrf.mxu2 }
 0x129   : > { %v944_v37 = vadd.f32 %v868_v1, %v623_v19  ;;  %v1147_v15 = vpop.f32.mrf.mxu3  ;;  %v625_v46 = vpop.f32.mrf.mxu1  ;;  %v4280_v1 = vld [vmem:[%s3639_s5 + $0x152] sm:$0xff] }
 0x12a   : > { %v626_v23 = vadd.f32 %v625_v46, %v3967_v25 }
 0x12b   : > { %v1223_v8 = vadd.f32 %v1147_v15, %v944_v37  ;;  %v4283_v15 = vld [vmem:[%s3639_s5 + $0x168] sm:$0xff] }
 0x12c   : > { %v1428_v33 = vpop.f32.mrf.mxu0  ;;  %3028 = vmatmul.msk.f32.gmra.mxu1 %vm262_vm1, %v4232_v38 }
 0x12d   : > { %v4268_v28 = vadd.f32 %v1425_v3, %v1223_v8  ;;  %3062 = vmatmul.msk.f32.gmra.mxu2 %vm262_vm1, %v4263_v59 }
 0x12e   : > { %3128 = vmatmul.msk.f32.gmra.mxu3 %vm262_vm1, %v4266_v11 }
 0x12f   : > { %5111 = vst [vmem:[#allocation46_spill] sm:$0xff] %v4268_v28  ;;  %3194 = vmatmul.msk.f32.gmra.mxu0 %vm262_vm1, %v3748_v30 }
 0x130   : > { %v871_v9 = vpop.f32.mrf.mxu2 }
 0x131   : > { %v945_v10 = vadd.f32 %v871_v9, %v626_v23  ;;  %v1150_v19 = vpop.f32.mrf.mxu3  ;;  %v628_v3 = vpop.f32.mrf.mxu1  ;;  %v4297_v9 = vld [vmem:[%s3639_s5 + $0x15a] sm:$0xff] }
 0x132   : > { %v629_v30 = vadd.f32 %v628_v3, %v3989_v42  ;;  %5113 = vst [vmem:[#allocation48_spill] sm:$0xff] %v4297_v9 }
 0x133   : > { %v1224_v37 = vadd.f32 %v1150_v19, %v945_v10  ;;  %v4300_v19 = vld [vmem:[%s3639_s5 + $0x170] sm:$0xff] }
 0x134   : > { %v1431_v8 = vpop.f32.mrf.mxu0  ;;  %3029 = vmatmul.msk.f32.gmra.mxu1 %vm262_vm1, %v4249_v7 }
 0x135   : > { %v4285_v28 = vadd.f32 %v1428_v33, %v1224_v37  ;;  %3063 = vmatmul.msk.f32.gmra.mxu2 %vm262_vm1, %v4280_v1 }
 0x136   : > { %3129 = vmatmul.msk.f32.gmra.mxu3 %vm262_vm1, %v4283_v15 }
 0x137   : > { %5112 = vst [vmem:[#allocation47_spill] sm:$0xff] %v4285_v28  ;;  %3195 = vmatmul.msk.f32.gmra.mxu0 %vm262_vm1, %v3772_v35 }
 0x138   : > { %v874_v25 = vpop.f32.mrf.mxu2 }
 0x139   : > { %v946_v46 = vadd.f32 %v874_v25, %v629_v30  ;;  %v1153_v23 = vpop.f32.mrf.mxu3  ;;  %v631_v33 = vpop.f32.mrf.mxu1 }
 0x13a   : > { %v632_v35 = vadd.f32 %v631_v33, %v4011_v41 }
 0x13b   : > { %v1225_v10 = vadd.f32 %v1153_v23, %v946_v46  ;;  %v4317_v23 = vld [vmem:[%s3639_s5 + $0x180] sm:$0xff] }
 0x13c   : > { %v1434_v37 = vpop.f32.mrf.mxu0  ;;  %3030 = vmatmul.msk.f32.gmra.mxu1 %vm262_vm1, %v4266_v11 }
 0x13d   : > { %v4302_v28 = vadd.f32 %v1431_v8, %v1225_v10  ;;  %3064 = vmatmul.msk.f32.gmra.mxu2 %vm262_vm1, %v4297_v9  ;;  %v4314_v8 = vld [vmem:[%s3639_s5 + $0x16a] sm:$0xff] }
 0x13e   : > { %3130 = vmatmul.msk.f32.gmra.mxu3 %vm262_vm1, %v4300_v19  ;;  %5115 = vst [vmem:[#allocation50_spill] sm:$0xff] %v4314_v8 }
 0x13f   : > { %5114 = vst [vmem:[#allocation49_spill] sm:$0xff] %v4302_v28  ;;  %3196 = vmatmul.msk.f32.gmra.mxu0 %vm262_vm1, %v3792_v39  ;;  %v4320_v28 = vld [vmem:[%s3639_s5 + $0x181] sm:$0xff] }
 0x140   : > { %v877_v42 = vpop.f32.mrf.mxu2 }
 0x141   : > { %v947_v3 = vadd.f32 %v877_v42, %v632_v35  ;;  %v1156_v30 = vpop.f32.mrf.mxu3  ;;  %v634_v25 = vpop.f32.mrf.mxu1 }
 0x142   : > { %v635_v39 = vadd.f32 %v634_v25, %v4033_v43 }
 0x143   : > { %v1226_v46 = vadd.f32 %v1156_v30, %v947_v3  ;;  %v4337_v30 = vld [vmem:[%s3639_s5 + $0x188] sm:$0xff] }
 0x144   : > { %v1437_v10 = vpop.f32.mrf.mxu0  ;;  %3031 = vmatmul.msk.f32.gmra.mxu1 %vm262_vm1, %v4283_v15 }
 0x145   : > { %v4322_v9 = vadd.f32 %v1434_v37, %v1226_v46  ;;  %3065 = vmatmul.msk.f32.gmra.mxu2 %vm262_vm1, %v4314_v8  ;;  %v4334_v37 = vld [vmem:[%s3639_s5 + $0x172] sm:$0xff] }
 0x146   : > { %3131 = vmatmul.msk.f32.gmra.mxu3 %vm262_vm1, %v4317_v23 }
 0x147   : > { %5116 = vst [vmem:[#allocation51_spill] sm:$0xff] %v4322_v9  ;;  %3197 = vmatmul.msk.f32.gmra.mxu0 %vm262_vm1, %v4320_v28  ;;  %v4340_v9 = vld [vmem:[%s3639_s5 + $0x189] sm:$0xff] }
 0x148   : > { %v880_v41 = vpop.f32.mrf.mxu2 }
 0x149   : > { %v948_v33 = vadd.f32 %v880_v41, %v635_v39  ;;  %v1159_v35 = vpop.f32.mrf.mxu3  ;;  %v637_v42 = vpop.f32.mrf.mxu1 }
 0x14a   : > { %v638_v43 = vadd.f32 %v637_v42, %v4055_v20 }
 0x14b   : > { %v1227_v3 = vadd.f32 %v1159_v35, %v948_v33 }
 0x14c   : > { %v1440_v46 = vpop.f32.mrf.mxu0  ;;  %3032 = vmatmul.msk.f32.gmra.mxu1 %vm262_vm1, %v4300_v19 }
 0x14d   : > { %v4342_v8 = vadd.f32 %v1437_v10, %v1227_v3  ;;  %3066 = vmatmul.msk.f32.gmra.mxu2 %vm262_vm1, %v4334_v37 }
 0x14e   : > { %3132 = vmatmul.msk.f32.gmra.mxu3 %vm262_vm1, %v4337_v30 }
 0x14f   : > { %3198 = vmatmul.msk.f32.gmra.mxu0 %vm262_vm1, %v4340_v9 }
 0x150   : > { %v883_v25 = vpop.f32.mrf.mxu2 }
 0x151   : > { %v949_v39 = vadd.f32 %v883_v25, %v638_v43  ;;  %v1162_v41 = vpop.f32.mrf.mxu3  ;;  %v640_v33 = vpop.f32.mrf.mxu1 }
 0x152   : > { %v641_v20 = vadd.f32 %v640_v33, %v3919_v63 }
 0x153   : > { %v1228_v10 = vadd.f32 %v1162_v41, %v949_v39 }
 0x154   : > { %v1443_v35 = vpop.f32.mrf.mxu0  ;;  %3233 = vmatmul.msk.f32.vlgmr.msra.gmra.mxu1 %vm262_vm1, %v3820_v47 }
 0x155   : > { %v4353_v3 = vadd.f32 %v1440_v46, %v1228_v10  ;;  %3299 = vmatmul.msk.f32.vlgmr.msra.gmra.mxu2 %vm262_vm1, %v3823_v48 }
 0x156   : > { %3365 = vmatmul.msk.f32.vlgmr.msra.gmra.mxu3 %vm262_vm1, %v3719_v24 }
 0x157   : > { %3431 = vmatmul.msk.f32.vlgmr.msra.gmra.mxu0 %vm262_vm1, %v3846_v51 }
 0x158   : > { %v886_v42 = vpop.f32.mrf.mxu2 }
 0x159   : > { %v950_v43 = vadd.f32 %v886_v42, %v641_v20  ;;  %v1165_v25 = vpop.f32.mrf.mxu3  ;;  %v643_v39 = vpop.f32.mrf.mxu1 }
 0x15a   : > { %v644_v24 = vadd.f32 %v643_v39, %v3941_v5 }
 0x15b   : > { %v1229_v46 = vadd.f32 %v1165_v25, %v950_v43 }
 0x15c   : > { %v1446_v41 = vpop.f32.mrf.mxu0  ;;  %3234 = vmatmul.msk.f32.gmra.mxu1 %vm262_vm1, %v3833_v49 }
 0x15d   : > { %v4364_v10 = vadd.f32 %v1443_v35, %v1229_v46  ;;  %3300 = vmatmul.msk.f32.gmra.mxu2 %vm262_vm1, %v3836_v50 }
 0x15e   : > { %3366 = vmatmul.msk.f32.gmra.mxu3 %vm262_vm1, %v3751_v31 }
 0x15f   : > { %3432 = vmatmul.msk.f32.gmra.mxu0 %vm262_vm1, %v3860_v53 }
 0x160   : > { %v889_v47 = vpop.f32.mrf.mxu2 }
 0x161   : > { %v951_v48 = vadd.f32 %v889_v47, %v644_v24  ;;  %v1168_v63 = vpop.f32.mrf.mxu3  ;;  %v646_v33 = vpop.f32.mrf.mxu1  ;;  %v3335_v47 = vld [vmem:[%s3639_s5 + $0x61] sm:$0xff] }
 0x162   : > { %v647_v31 = vadd.f32 %v646_v33, %v3963_v17 }
 0x163   : > { %v1230_v35 = vadd.f32 %v1168_v63, %v951_v48 }
 0x164   : > { %v1449_v20 = vpop.f32.mrf.mxu0  ;;  %3235 = vmatmul.msk.f32.gmra.mxu1 %vm262_vm1, %v3846_v51 }
 0x165   : > { %v4375_v42 = vadd.f32 %v1446_v41, %v1230_v35  ;;  %3301 = vmatmul.msk.f32.gmra.mxu2 %vm262_vm1, %v3849_v52 }
 0x166   : > { %3367 = vmatmul.msk.f32.gmra.mxu3 %vm262_vm1, %v3775_v36 }
 0x167   : > { %3433 = vmatmul.msk.f32.gmra.mxu0 %vm262_vm1, %v3874_v55 }
 0x168   : > { %v892_v49 = vpop.f32.mrf.mxu2 }
 0x169   : > { %v952_v50 = vadd.f32 %v892_v49, %v647_v31  ;;  %v1171_v5 = vpop.f32.mrf.mxu3  ;;  %v649_v43 = vpop.f32.mrf.mxu1  ;;  %v3336_v31 = vld [vmem:[%s3639_s5 + $0x69] sm:$0xff] }
 0x16a   : > { %v650_v36 = vadd.f32 %v649_v43, %v3985_v21 }
 0x16b   : > { %v1231_v25 = vadd.f32 %v1171_v5, %v952_v50  ;;  %v5120_v5 = vld [vmem:[#allocation26_spill] sm:$0xff] }
 0x16c   : > { %v1452_v39 = vpop.f32.mrf.mxu0  ;;  %3236 = vmatmul.msk.f32.gmra.mxu1 %vm262_vm1, %v3860_v53 }
 0x16d   : > { %v4386_v46 = vadd.f32 %v1449_v20, %v1231_v25  ;;  %3302 = vmatmul.msk.f32.gmra.mxu2 %vm262_vm1, %v3863_v54 }
 0x16e   : > { %3368 = vmatmul.msk.f32.gmra.mxu3 %vm262_vm1, %v3795_v40  ;;  %v5117_v40 = vld [vmem:[#allocation22_spill] sm:$0xff] }
 0x16f   : > { %3434 = vmatmul.msk.f32.gmra.mxu0 %vm262_vm1, %v3888_v57 }
 0x170   : > { %v895_v51 = vpop.f32.mrf.mxu2 }
 0x171   : > { %v953_v52 = vadd.f32 %v895_v51, %v650_v36  ;;  %v1174_v17 = vpop.f32.mrf.mxu3  ;;  %v652_v41 = vpop.f32.mrf.mxu1 }
 0x172   : > { %v653_v54 = vadd.f32 %v652_v41, %v5117_v40 }
 0x173   : > { %v1232_v24 = vadd.f32 %v1174_v17, %v953_v52  ;;  %v3337_v17 = vld [vmem:[%s3639_s5 + $0x79] sm:$0xff] }
 0x174   : > { %v1455_v48 = vpop.f32.mrf.mxu0  ;;  %3237 = vmatmul.msk.f32.gmra.mxu1 %vm262_vm1, %v3874_v55  ;;  %v5118_v55 = vld [vmem:[#allocation8_spill] sm:$0xff] }
 0x175   : > { %v4398_v53 = vadd.f32 %v1452_v39, %v1232_v24  ;;  %3303 = vmatmul.msk.f32.gmra.mxu2 %vm262_vm1, %v3877_v56  ;;  %v5119_v56 = vld [vmem:[#allocation11_spill] sm:$0xff] }
 0x176   : > { %3369 = vmatmul.msk.f32.gmra.mxu3 %vm262_vm1, %v3335_v47  ;;  %v5122_v47 = vld [vmem:[#allocation14_spill] sm:$0xff] }
 0x177   : > { %3435 = vmatmul.msk.f32.gmra.mxu0 %vm262_vm1, %v3904_v60 }
 0x178   : > { %v898_v21 = vpop.f32.mrf.mxu2 }
 0x179   : > { %v954_v63 = vadd.f32 %v898_v21, %v653_v54  ;;  %v1177_v33 = vpop.f32.mrf.mxu3  ;;  %v655_v35 = vpop.f32.mrf.mxu1 }
 0x17a   : > { %v656_v43 = vadd.f32 %v655_v35, %v5120_v5  ;;  %v5126_v5 = vld [vmem:[#allocation33_spill] sm:$0xff] }
 0x17b   : > { %v1233_v20 = vadd.f32 %v1177_v33, %v954_v63 }
 0x17c   : > { %v1458_v49 = vpop.f32.mrf.mxu0  ;;  %3238 = vmatmul.msk.f32.gmra.mxu1 %vm262_vm1, %v3888_v57  ;;  %v5121_v57 = vld [vmem:[#allocation9_spill] sm:$0xff] }
 0x17d   : > { %v4409_v50 = vadd.f32 %v1455_v48, %v1233_v20  ;;  %3304 = vmatmul.msk.f32.gmra.mxu2 %vm262_vm1, %v5118_v55  ;;  %v5123_v48 = vld [vmem:[#allocation30_spill] sm:$0xff]  ;;  %v3338_v20 = vld [vmem:[%s3639_s5 + $0x81] sm:$0xff]  ;;  %v5125_v55 = vld [vmem:[#allocation17_spill] sm:$0xff] }
 0x17e   : > { %3370 = vmatmul.msk.f32.gmra.mxu3 %vm262_vm1, %v3336_v31 }
 0x17f   : > { %3436 = vmatmul.msk.f32.gmra.mxu0 %vm262_vm1, %v5119_v56 }
 0x180   : > { %v901_v25 = vpop.f32.mrf.mxu2 }
 0x181   : > { %v955_v39 = vadd.f32 %v901_v25, %v656_v43  ;;  %v1180_v36 = vpop.f32.mrf.mxu3  ;;  %v658_v51 = vpop.f32.mrf.mxu1 }
 0x182   : > { %v659_v40 = vadd.f32 %v658_v51, %v5123_v48  ;;  %v5128_v48 = vld [vmem:[#allocation20_spill] sm:$0xff] }
 0x183   : > { %v1234_v52 = vadd.f32 %v1180_v36, %v955_v39 }
 0x184   : > { %v1461_v41 = vpop.f32.mrf.mxu0  ;;  %3239 = vmatmul.msk.f32.gmra.mxu1 %vm262_vm1, %v3904_v60  ;;  %v5124_v60 = vld [vmem:[#allocation12_spill] sm:$0xff] }
 0x185   : > { %v4420_v24 = vadd.f32 %v1458_v49, %v1234_v52  ;;  %3305 = vmatmul.msk.f32.gmra.mxu2 %vm262_vm1, %v5121_v57 }
 0x186   : > { %3371 = vmatmul.msk.f32.gmra.mxu3 %vm262_vm1, %v3337_v17  ;;  %v3339_v17 = vld [vmem:[%s3639_s5 + $0x91] sm:$0xff] }
 0x187   : > { %3437 = vmatmul.msk.f32.gmra.mxu0 %vm262_vm1, %v5122_v47 }
 0x188   : > { %v904_v54 = vpop.f32.mrf.mxu2 }
 0x189   : > { %v956_v21 = vadd.f32 %v904_v54, %v659_v40  ;;  %v1183_v63 = vpop.f32.mrf.mxu3  ;;  %v661_v33 = vpop.f32.mrf.mxu1  ;;  %v5129_v40 = vld [vmem:[#allocation10_spill] sm:$0xff] }
 0x18a   : > { %v662_v43 = vadd.f32 %v661_v33, %v5126_v5 }
 0x18b   : > { %v1235_v35 = vadd.f32 %v1183_v63, %v956_v21 }
 0x18c   : > { %v1464_v31 = vpop.f32.mrf.mxu0  ;;  %3240 = vmatmul.msk.f32.gmra.mxu1 %vm262_vm1, %v5119_v56  ;;  %v5127_v56 = vld [vmem:[#allocation15_spill] sm:$0xff] }
 0x18d   : > { %v4431_v49 = vadd.f32 %v1461_v41, %v1235_v35  ;;  %3306 = vmatmul.msk.f32.gmra.mxu2 %vm262_vm1, %v5124_v60 }
 0x18e   : > { %3372 = vmatmul.msk.f32.gmra.mxu3 %vm262_vm1, %v3338_v20 }
 0x18f   : > { %3438 = vmatmul.msk.f32.gmra.mxu0 %vm262_vm1, %v5125_v55 }
 0x190   : > { %v907_v25 = vpop.f32.mrf.mxu2 }
 0x191   : > { %v957_v39 = vadd.f32 %v907_v25, %v662_v43  ;;  %v1186_v36 = vpop.f32.mrf.mxu3  ;;  %v664_v51 = vpop.f32.mrf.mxu1  ;;  %v5131_v43 = vld [vmem:[#allocation24_spill] sm:$0xff]  ;;  %v5132_v25 = vld [vmem:[#allocation13_spill] sm:$0xff] }
 0x192   : > { %v665_v54 = vadd.f32 %v664_v51, %v5129_v40 }
 0x193   : > { %v1236_v52 = vadd.f32 %v1186_v36, %v957_v39 }
 0x194   : > { %v1467_v41 = vpop.f32.mrf.mxu0  ;;  %3241 = vmatmul.msk.f32.gmra.mxu1 %vm262_vm1, %v5122_v47  ;;  %v5130_v47 = vld [vmem:[#allocation18_spill] sm:$0xff] }
 0x195   : > { %v4442_v57 = vadd.f32 %v1464_v31, %v1236_v52  ;;  %3307 = vmatmul.msk.f32.gmra.mxu2 %vm262_vm1, %v5127_v56  ;;  %v3340_v31 = vld [vmem:[%s3639_s5 + $0x99] sm:$0xff]  ;;  %v3341_v56 = vld [vmem:[%s3639_s5 + $0xa9] sm:$0xff] }
 0x196   : > { %3373 = vmatmul.msk.f32.gmra.mxu3 %vm262_vm1, %v3339_v17 }
 0x197   : > { %3439 = vmatmul.msk.f32.gmra.mxu0 %vm262_vm1, %v5128_v48 }
 0x198   : > { %v910_v21 = vpop.f32.mrf.mxu2 }
 0x199   : > { %v958_v63 = vadd.f32 %v910_v21, %v665_v54  ;;  %v1189_v33 = vpop.f32.mrf.mxu3  ;;  %v667_v35 = vpop.f32.mrf.mxu1  ;;  %v5134_v21 = vld [vmem:[#allocation28_spill] sm:$0xff] }
 0x19a   : > { %v668_v39 = vadd.f32 %v667_v35, %v5132_v25  ;;  %v3342_v25 = vld [vmem:[%s3639_s5 + $0xb1] sm:$0xff] }
 0x19b   : > { %v1237_v20 = vadd.f32 %v1189_v33, %v958_v63  ;;  %v5135_v63 = vld [vmem:[#allocation16_spill] sm:$0xff] }
 0x19c   : > { %v1470_v60 = vpop.f32.mrf.mxu0  ;;  %3242 = vmatmul.msk.f32.gmra.mxu1 %vm262_vm1, %v5125_v55  ;;  %v5133_v55 = vld [vmem:[#allocation21_spill] sm:$0xff] }
 0x19d   : > { %v4453_v5 = vadd.f32 %v1467_v41, %v1237_v20  ;;  %3308 = vmatmul.msk.f32.gmra.mxu2 %vm262_vm1, %v5130_v47 }
 0x19e   : > { %3374 = vmatmul.msk.f32.gmra.mxu3 %vm262_vm1, %v3340_v31 }
 0x19f   : > { %3440 = vmatmul.msk.f32.gmra.mxu0 %vm262_vm1, %v5131_v43 }
 0x1a0   : > { %v913_v36 = vpop.f32.mrf.mxu2 }
 0x1a1   : > { %v959_v51 = vadd.f32 %v913_v36, %v668_v39  ;;  %v1192_v52 = vpop.f32.mrf.mxu3  ;;  %v670_v17 = vpop.f32.mrf.mxu1 }
 0x1a2   : > { %v671_v33 = vadd.f32 %v670_v17, %v5135_v63 }
 0x1a3   : > { %v1238_v41 = vadd.f32 %v1192_v52, %v959_v51  ;;  %v5137_v51 = vld [vmem:[#allocation32_spill] sm:$0xff]  ;;  %v5138_v52 = vld [vmem:[#allocation19_spill] sm:$0xff] }
 0x1a4   : > { %v1473_v40 = vpop.f32.mrf.mxu0  ;;  %3243 = vmatmul.msk.f32.gmra.mxu1 %vm262_vm1, %v5128_v48  ;;  %v5136_v48 = vld [vmem:[#allocation25_spill] sm:$0xff] }
 0x1a5   : > { %v4464_v54 = vadd.f32 %v1470_v60, %v1238_v41  ;;  %3309 = vmatmul.msk.f32.gmra.mxu2 %vm262_vm1, %v5133_v55 }
 0x1a6   : > { %3375 = vmatmul.msk.f32.gmra.mxu3 %vm262_vm1, %v3341_v56 }
 0x1a7   : > { %3441 = vmatmul.msk.f32.gmra.mxu0 %vm262_vm1, %v5134_v21 }
 0x1a8   : > { %v916_v35 = vpop.f32.mrf.mxu2 }
 0x1a9   : > { %v960_v20 = vadd.f32 %v916_v35, %v671_v33  ;;  %v1195_v31 = vpop.f32.mrf.mxu3  ;;  %v673_v47 = vpop.f32.mrf.mxu1  ;;  %v3343_v33 = vld [vmem:[%s3639_s5 + $0xc1] sm:$0xff] }
 0x1aa   : > { %v674_v17 = vadd.f32 %v673_v47, %v5138_v52  ;;  %v5141_v47 = vld [vmem:[#allocation23_spill] sm:$0xff] }
 0x1ab   : > { %v1239_v60 = vadd.f32 %v1195_v31, %v960_v20  ;;  %v5140_v31 = vld [vmem:[#allocation35_spill] sm:$0xff] }
 0x1ac   : > { %v1476_v39 = vpop.f32.mrf.mxu0  ;;  %3244 = vmatmul.msk.f32.gmra.mxu1 %vm262_vm1, %v5131_v43  ;;  %v5139_v43 = vld [vmem:[#allocation29_spill] sm:$0xff] }
 0x1ad   : > { %v4475_v36 = vadd.f32 %v1473_v40, %v1239_v60  ;;  %3310 = vmatmul.msk.f32.gmra.mxu2 %vm262_vm1, %v5136_v48 }
 0x1ae   : > { %3376 = vmatmul.msk.f32.gmra.mxu3 %vm262_vm1, %v3342_v25 }
 0x1af   : > { %3442 = vmatmul.msk.f32.gmra.mxu0 %vm262_vm1, %v5137_v51 }
 0x1b0   : > { %v919_v41 = vpop.f32.mrf.mxu2 }
 0x1b1   : > { %v961_v56 = vadd.f32 %v919_v41, %v674_v17  ;;  %v1198_v55 = vpop.f32.mrf.mxu3  ;;  %v676_v63 = vpop.f32.mrf.mxu1  ;;  %v3344_v41 = vld [vmem:[%s3639_s5 + $0xc9] sm:$0xff] }
 0x1b2   : > { %v677_v60 = vadd.f32 %v676_v63, %v5141_v47 }
 0x1b3   : > { %v1240_v40 = vadd.f32 %v1198_v55, %v961_v56 }
 0x1b4   : > { %v1479_v35 = vpop.f32.mrf.mxu0  ;;  %3245 = vmatmul.msk.f32.gmra.mxu1 %vm262_vm1, %v5134_v21  ;;  %v5142_v21 = vld [vmem:[#allocation27_spill] sm:$0xff] }
 0x1b5   : > { %v4486_v20 = vadd.f32 %v1476_v39, %v1240_v40  ;;  %3311 = vmatmul.msk.f32.gmra.mxu2 %vm262_vm1, %v5139_v43 }
 0x1b6   : > { %3377 = vmatmul.msk.f32.gmra.mxu3 %vm262_vm1, %v3343_v33 }
 0x1b7   : > { %3443 = vmatmul.msk.f32.gmra.mxu0 %vm262_vm1, %v5140_v31 }
 0x1b8   : > { %v922_v25 = vpop.f32.mrf.mxu2 }
 0x1b9   : > { %v962_v48 = vadd.f32 %v922_v25, %v677_v60  ;;  %v1201_v52 = vpop.f32.mrf.mxu3  ;;  %v679_v17 = vpop.f32.mrf.mxu1  ;;  %v3345_v60 = vld [vmem:[%s3639_s5 + $0xd9] sm:$0xff] }
 0x1ba   : > { %v680_v63 = vadd.f32 %v679_v17, %v5142_v21  ;;  %v3346_v21 = vld [vmem:[%s3639_s5 + $0xe1] sm:$0xff] }
 0x1bb   : > { %v1241_v39 = vadd.f32 %v1201_v52, %v962_v48 }
 0x1bc   : > { %v1482_v56 = vpop.f32.mrf.mxu0  ;;  %3246 = vmatmul.msk.f32.gmra.mxu1 %vm262_vm1, %v5137_v51 }
 0x1bd   : > { %v4497_v55 = vadd.f32 %v1479_v35, %v1241_v39  ;;  %3312 = vmatmul.msk.f32.gmra.mxu2 %vm262_vm1, %v4061_v44  ;;  %v5143_v44 = vld [vmem:[#allocation31_spill] sm:$0xff] }
 0x1be   : > { %3378 = vmatmul.msk.f32.gmra.mxu3 %vm262_vm1, %v3344_v41 }
 0x1bf   : > { %3444 = vmatmul.msk.f32.gmra.mxu0 %vm262_vm1, %v4093_v2 }
 0x1c0   : > { %v925_v40 = vpop.f32.mrf.mxu2 }
 0x1c1   : > { %v963_v33 = vadd.f32 %v925_v40, %v680_v63  ;;  %v1204_v43 = vpop.f32.mrf.mxu3  ;;  %v682_v47 = vpop.f32.mrf.mxu1 }
 0x1c2   : > { %v683_v51 = vadd.f32 %v682_v47, %v5143_v44 }
 0x1c3   : > { %v1242_v35 = vadd.f32 %v1204_v43, %v963_v33 }
 0x1c4   : > { %v1485_v25 = vpop.f32.mrf.mxu0  ;;  %3247 = vmatmul.msk.f32.gmra.mxu1 %vm262_vm1, %v5140_v31 }
 0x1c5   : > { %v4508_v48 = vadd.f32 %v1482_v56, %v1242_v35  ;;  %3313 = vmatmul.msk.f32.gmra.mxu2 %vm262_vm1, %v4081_v61  ;;  %v5144_v61 = vld [vmem:[#allocation34_spill] sm:$0xff] }
 0x1c6   : > { %3379 = vmatmul.msk.f32.gmra.mxu3 %vm262_vm1, %v3345_v60 }
 0x1c7   : > { %3445 = vmatmul.msk.f32.gmra.mxu0 %vm262_vm1, %v4110_v27 }
 0x1c8   : > { %v928_v52 = vpop.f32.mrf.mxu2 }
 0x1c9   : > { %v964_v17 = vadd.f32 %v928_v52, %v683_v51  ;;  %v1207_v39 = vpop.f32.mrf.mxu3  ;;  %v685_v41 = vpop.f32.mrf.mxu1 }
 0x1ca   : > { %v686_v31 = vadd.f32 %v685_v41, %v5144_v61 }
 0x1cb   : > { %v1243_v56 = vadd.f32 %v1207_v39, %v964_v17 }
 0x1cc   : > { %v1488_v63 = vpop.f32.mrf.mxu0  ;;  %3248 = vmatmul.msk.f32.gmra.mxu1 %vm262_vm1, %v4093_v2 }
 0x1cd   : > { %v4519_v40 = vadd.f32 %v1485_v25, %v1243_v56  ;;  %3314 = vmatmul.msk.f32.gmra.mxu2 %vm262_vm1, %v4096_v58  ;;  %v3347_v25 = vld [vmem:[%s3639_s5 + $0xf1] sm:$0xff]  ;;  %v5145_v58 = vld [vmem:[#allocation36_spill] sm:$0xff] }
 0x1ce   : > { %3380 = vmatmul.msk.f32.gmra.mxu3 %vm262_vm1, %v3346_v21  ;;  %v3348_v21 = vld [vmem:[%s3639_s5 + $0xf9] sm:$0xff] }
 0x1cf   : > { %3446 = vmatmul.msk.f32.gmra.mxu0 %vm262_vm1, %v4127_v62 }
 0x1d0   : > { %v931_v33 = vpop.f32.mrf.mxu2 }
 0x1d1   : > { %v965_v43 = vadd.f32 %v931_v33, %v686_v31  ;;  %v1210_v47 = vpop.f32.mrf.mxu3  ;;  %v1673_v35 = vpop.f32.mrf.mxu1 }
 0x1d2   : > { %v1769_v51 = vadd.f32 %v1673_v35, %v5145_v58  ;;  %v3349_v35 = vld [vmem:[%s3639_s5 + $0x109] sm:$0xff] }
 0x1d3   : > { %v1244_v60 = vadd.f32 %v1210_v47, %v965_v43 }
 0x1d4   : > { %v2508_v44 = vpop.f32.mrf.mxu0  ;;  %3249 = vmatmul.msk.f32.gmra.mxu1 %vm262_vm1, %v4110_v27 }
 0x1d5   : > { %v4530_v2 = vadd.f32 %v1488_v63, %v1244_v60  ;;  %3315 = vmatmul.msk.f32.gmra.mxu2 %vm262_vm1, %v4113_v6  ;;  %v5146_v6 = vld [vmem:[#allocation37_spill] sm:$0xff] }
 0x1d6   : > { %3381 = vmatmul.msk.f32.gmra.mxu3 %vm262_vm1, %v3347_v25  ;;  %v5147_v25 = vld [vmem:[#allocation38_spill] sm:$0xff] }
 0x1d7   : > { %3447 = vmatmul.msk.f32.gmra.mxu0 %vm262_vm1, %v4144_v4 }
 0x1d8   : > { %v1952_v52 = vpop.f32.mrf.mxu2 }
 0x1d9   : > { %v2048_v17 = vadd.f32 %v1952_v52, %v1769_v51  ;;  %v2230_v39 = vpop.f32.mrf.mxu3  ;;  %v1676_v41 = vpop.f32.mrf.mxu1 }
 0x1da   : > { %v1770_v61 = vadd.f32 %v1676_v41, %v5146_v6 }
 0x1db   : > { %v2326_v56 = vadd.f32 %v2230_v39, %v2048_v17  ;;  %v3350_v39 = vld [vmem:[%s3639_s5 + $0x111] sm:$0xff] }
 0x1dc   : > { %v2511_v63 = vpop.f32.mrf.mxu0  ;;  %3250 = vmatmul.msk.f32.gmra.mxu1 %vm262_vm1, %v4127_v62 }
 0x1dd   : > { %v4547_v27 = vadd.f32 %v2508_v44, %v2326_v56  ;;  %3316 = vmatmul.msk.f32.gmra.mxu2 %vm262_vm1, %v4130_v13  ;;  %v5148_v56 = vld [vmem:[#allocation39_spill] sm:$0xff] }
 0x1de   : > { %3382 = vmatmul.msk.f32.gmra.mxu3 %vm262_vm1, %v3348_v21 }
 0x1df   : > { %3448 = vmatmul.msk.f32.gmra.mxu0 %vm262_vm1, %v4161_v16  ;;  %2637 = vst.msk [vmem:[%s4545_s19] sm:$0xff] %vm2636_vm2, %v4547_v27 }
 0x1e0   : > { %v1955_v31 = vpop.f32.mrf.mxu2 }
 0x1e1   : > { %v2049_v33 = vadd.f32 %v1955_v31, %v1770_v61  ;;  %v2233_v43 = vpop.f32.mrf.mxu3  ;;  %v1679_v47 = vpop.f32.mrf.mxu1 }
 0x1e2   : > { %v1771_v44 = vadd.f32 %v1679_v47, %v5147_v25  ;;  %v5149_v47 = vld [vmem:[#allocation40_spill] sm:$0xff] }
 0x1e3   : > { %v2327_v62 = vadd.f32 %v2233_v43, %v2049_v33  ;;  %v3351_v33 = vld [vmem:[%s3639_s5 + $0x121] sm:$0xff] }
 0x1e4   : > { %v2514_v60 = vpop.f32.mrf.mxu0  ;;  %3251 = vmatmul.msk.f32.gmra.mxu1 %vm262_vm1, %v4144_v4 }
 0x1e5   : > { %v4561_v13 = vadd.f32 %v2511_v63, %v2327_v62  ;;  %3317 = vmatmul.msk.f32.gmra.mxu2 %vm262_vm1, %v4147_v14 }
 0x1e6   : > { %3383 = vmatmul.msk.f32.gmra.mxu3 %vm262_vm1, %v3349_v35 }
 0x1e7   : > { %3449 = vmatmul.msk.f32.gmra.mxu0 %vm262_vm1, %v4178_v32  ;;  %2638 = vst.msk [vmem:[%s4545_s19 + $0x8] sm:$0xff] %vm2636_vm2, %v4561_v13 }
 0x1e8   : > { %v1958_v58 = vpop.f32.mrf.mxu2 }
 0x1e9   : > { %v2050_v51 = vadd.f32 %v1958_v58, %v1771_v44  ;;  %v2236_v52 = vpop.f32.mrf.mxu3  ;;  %v1682_v17 = vpop.f32.mrf.mxu1  ;;  %v3352_v58 = vld [vmem:[%s3639_s5 + $0x129] sm:$0xff] }
 0x1ea   : > { %v1772_v21 = vadd.f32 %v1682_v17, %v5148_v56 }
 0x1eb   : > { %v2328_v4 = vadd.f32 %v2236_v52, %v2050_v51  ;;  %v5150_v52 = vld [vmem:[#allocation41_spill] sm:$0xff] }
 0x1ec   : > { %v2517_v41 = vpop.f32.mrf.mxu0  ;;  %3252 = vmatmul.msk.f32.gmra.mxu1 %vm262_vm1, %v4161_v16 }
 0x1ed   : > { %v4575_v14 = vadd.f32 %v2514_v60, %v2328_v4  ;;  %3318 = vmatmul.msk.f32.gmra.mxu2 %vm262_vm1, %v4164_v18 }
 0x1ee   : > { %3384 = vmatmul.msk.f32.gmra.mxu3 %vm262_vm1, %v3350_v39 }
 0x1ef   : > { %3450 = vmatmul.msk.f32.gmra.mxu0 %vm262_vm1, %v4195_v45  ;;  %2639 = vst.msk [vmem:[%s4545_s19 + $0x10] sm:$0xff] %vm2636_vm2, %v4575_v14 }
 0x1f0   : > { %v1961_v63 = vpop.f32.mrf.mxu2 }
 0x1f1   : > { %v2051_v6 = vadd.f32 %v1961_v63, %v1772_v21  ;;  %v2239_v61 = vpop.f32.mrf.mxu3  ;;  %v1685_v31 = vpop.f32.mrf.mxu1  ;;  %v3353_v21 = vld [vmem:[%s3639_s5 + $0x139] sm:$0xff] }
 0x1f2   : > { %v1773_v62 = vadd.f32 %v1685_v31, %v5149_v47  ;;  %v3354_v47 = vld [vmem:[%s3639_s5 + $0x141] sm:$0xff] }
 0x1f3   : > { %v2329_v16 = vadd.f32 %v2239_v61, %v2051_v6  ;;  %v5151_v6 = vld [vmem:[#allocation42_spill] sm:$0xff] }
 0x1f4   : > { %v2520_v43 = vpop.f32.mrf.mxu0  ;;  %3253 = vmatmul.msk.f32.gmra.mxu1 %vm262_vm1, %v4178_v32 }
 0x1f5   : > { %v4589_v18 = vadd.f32 %v2517_v41, %v2329_v16  ;;  %3319 = vmatmul.msk.f32.gmra.mxu2 %vm262_vm1, %v4181_v22 }
 0x1f6   : > { %3385 = vmatmul.msk.f32.gmra.mxu3 %vm262_vm1, %v3351_v33 }
 0x1f7   : > { %3451 = vmatmul.msk.f32.gmra.mxu0 %vm262_vm1, %v4212_v0  ;;  %2640 = vst.msk [vmem:[%s4545_s19 + $0x18] sm:$0xff] %vm2636_vm2, %v4589_v18 }
 0x1f8   : > { %v1964_v35 = vpop.f32.mrf.mxu2 }
 0x1f9   : > { %v2052_v60 = vadd.f32 %v1964_v35, %v1773_v62  ;;  %v2242_v25 = vpop.f32.mrf.mxu3  ;;  %v1688_v44 = vpop.f32.mrf.mxu1  ;;  %v5152_v35 = vld [vmem:[#allocation43_spill] sm:$0xff] }
 0x1fa   : > { %v1774_v17 = vadd.f32 %v1688_v44, %v5150_v52 }
 0x1fb   : > { %v2330_v32 = vadd.f32 %v2242_v25, %v2052_v60 }
 0x1fc   : > { %v2523_v51 = vpop.f32.mrf.mxu0  ;;  %3254 = vmatmul.msk.f32.gmra.mxu1 %vm262_vm1, %v4195_v45 }
 0x1fd   : > { %v4603_v22 = vadd.f32 %v2520_v43, %v2330_v32  ;;  %3320 = vmatmul.msk.f32.gmra.mxu2 %vm262_vm1, %v4198_v29 }
 0x1fe   : > { %3386 = vmatmul.msk.f32.gmra.mxu3 %vm262_vm1, %v3352_v58 }
 0x1ff   : > { %3452 = vmatmul.msk.f32.gmra.mxu0 %vm262_vm1, %v4229_v26  ;;  %2641 = vst.msk [vmem:[%s4545_s19 + $0x20] sm:$0xff] %vm2636_vm2, %v4603_v22 }
 0x200   : > { %v1967_v4 = vpop.f32.mrf.mxu2 }
 0x201   : > { %v2053_v39 = vadd.f32 %v1967_v4, %v1774_v17  ;;  %v2245_v41 = vpop.f32.mrf.mxu3  ;;  %v1691_v56 = vpop.f32.mrf.mxu1  ;;  %v5153_v17 = vld [vmem:[#allocation44_spill] sm:$0xff] }
 0x202   : > { %v1775_v61 = vadd.f32 %v1691_v56, %v5151_v6  ;;  %v5154_v6 = vld [vmem:[#allocation48_spill] sm:$0xff] }
 0x203   : > { %v2331_v45 = vadd.f32 %v2245_v41, %v2053_v39 }
 0x204   : > { %v2526_v63 = vpop.f32.mrf.mxu0  ;;  %3255 = vmatmul.msk.f32.gmra.mxu1 %vm262_vm1, %v4212_v0 }
 0x205   : > { %v4617_v29 = vadd.f32 %v2523_v51, %v2331_v45  ;;  %3321 = vmatmul.msk.f32.gmra.mxu2 %vm262_vm1, %v4215_v34  ;;  %v3355_v51 = vld [vmem:[%s3639_s5 + $0x151] sm:$0xff] }
 0x206   : > { %3387 = vmatmul.msk.f32.gmra.mxu3 %vm262_vm1, %v3353_v21  ;;  %v3356_v21 = vld [vmem:[%s3639_s5 + $0x159] sm:$0xff] }
 0x207   : > { %3453 = vmatmul.msk.f32.gmra.mxu0 %vm262_vm1, %v4246_v12  ;;  %2642 = vst.msk [vmem:[%s4545_s19 + $0x28] sm:$0xff] %vm2636_vm2, %v4617_v29 }
 0x208   : > { %v1970_v31 = vpop.f32.mrf.mxu2 }
 0x209   : > { %v2054_v16 = vadd.f32 %v1970_v31, %v1775_v61  ;;  %v2248_v33 = vpop.f32.mrf.mxu3  ;;  %v1694_v43 = vpop.f32.mrf.mxu1  ;;  %v5155_v61 = vld [vmem:[#allocation45_spill] sm:$0xff] }
 0x20a   : > { %v1776_v60 = vadd.f32 %v1694_v43, %v5152_v35  ;;  %v5156_v35 = vld [vmem:[#allocation50_spill] sm:$0xff] }
 0x20b   : > { %v2332_v0 = vadd.f32 %v2248_v33, %v2054_v16 }
 0x20c   : > { %v2529_v62 = vpop.f32.mrf.mxu0  ;;  %3256 = vmatmul.msk.f32.gmra.mxu1 %vm262_vm1, %v4229_v26 }
 0x20d   : > { %v4631_v34 = vadd.f32 %v2526_v63, %v2332_v0  ;;  %3322 = vmatmul.msk.f32.gmra.mxu2 %vm262_vm1, %v4232_v38 }
 0x20e   : > { %3388 = vmatmul.msk.f32.gmra.mxu3 %vm262_vm1, %v3354_v47  ;;  %v3357_v47 = vld [vmem:[%s3639_s5 + $0x169] sm:$0xff] }
 0x20f   : > { %3454 = vmatmul.msk.f32.gmra.mxu0 %vm262_vm1, %v4263_v59  ;;  %2643 = vst.msk [vmem:[%s4545_s19 + $0x30] sm:$0xff] %vm2636_vm2, %v4631_v34 }
 0x210   : > { %v1973_v25 = vpop.f32.mrf.mxu2 }
 0x211   : > { %v2055_v44 = vadd.f32 %v1973_v25, %v1776_v60  ;;  %v2251_v32 = vpop.f32.mrf.mxu3  ;;  %v1697_v58 = vpop.f32.mrf.mxu1  ;;  %v5157_v60 = vld [vmem:[#allocation46_spill] sm:$0xff] }
 0x212   : > { %v1777_v4 = vadd.f32 %v1697_v58, %v5153_v17  ;;  %v5158_v17 = vld [vmem:[#allocation47_spill] sm:$0xff] }
 0x213   : > { %v2333_v26 = vadd.f32 %v2251_v32, %v2055_v44 }
 0x214   : > { %v2532_v52 = vpop.f32.mrf.mxu0  ;;  %3257 = vmatmul.msk.f32.gmra.mxu1 %vm262_vm1, %v4246_v12 }
 0x215   : > { %v4645_v38 = vadd.f32 %v2529_v62, %v2333_v26  ;;  %3323 = vmatmul.msk.f32.gmra.mxu2 %vm262_vm1, %v4249_v7 }
 0x216   : > { %3389 = vmatmul.msk.f32.gmra.mxu3 %vm262_vm1, %v3355_v51 }
 0x217   : > { %3455 = vmatmul.msk.f32.gmra.mxu0 %vm262_vm1, %v4280_v1  ;;  %2644 = vst.msk [vmem:[%s4545_s19 + $0x38] sm:$0xff] %vm2636_vm2, %v4645_v38 }
 0x218   : > { %v1976_v39 = vpop.f32.mrf.mxu2 }
 0x219   : > { %v2056_v41 = vadd.f32 %v1976_v39, %v1777_v4  ;;  %v2254_v56 = vpop.f32.mrf.mxu3  ;;  %v1700_v45 = vpop.f32.mrf.mxu1 }
 0x21a   : > { %v1778_v31 = vadd.f32 %v1700_v45, %v5155_v61 }
 0x21b   : > { %v2334_v12 = vadd.f32 %v2254_v56, %v2056_v41 }
 0x21c   : > { %v2535_v63 = vpop.f32.mrf.mxu0  ;;  %3258 = vmatmul.msk.f32.gmra.mxu1 %vm262_vm1, %v4263_v59 }
 0x21d   : > { %v4659_v7 = vadd.f32 %v2532_v52, %v2334_v12  ;;  %3324 = vmatmul.msk.f32.gmra.mxu2 %vm262_vm1, %v4266_v11 }
 0x21e   : > { %3390 = vmatmul.msk.f32.gmra.mxu3 %vm262_vm1, %v3356_v21 }
 0x21f   : > { %3456 = vmatmul.msk.f32.gmra.mxu0 %vm262_vm1, %v5154_v6  ;;  %2645 = vst.msk [vmem:[%s4545_s19 + $0x40] sm:$0xff] %vm2636_vm2, %v4659_v7 }
 0x220   : > { %v1979_v16 = vpop.f32.mrf.mxu2 }
 0x221   : > { %v2057_v33 = vadd.f32 %v1979_v16, %v1778_v31  ;;  %v2257_v43 = vpop.f32.mrf.mxu3  ;;  %v1703_v0 = vpop.f32.mrf.mxu1 }
 0x222   : > { %v1779_v25 = vadd.f32 %v1703_v0, %v5157_v60 }
 0x223   : > { %v2335_v59 = vadd.f32 %v2257_v43, %v2057_v33 }
 0x224   : > { %v2538_v62 = vpop.f32.mrf.mxu0  ;;  %3259 = vmatmul.msk.f32.gmra.mxu1 %vm262_vm1, %v4280_v1  ;;  %v3358_v1 = vld [vmem:[%s3639_s5 + $0x171] sm:$0xff] }
 0x225   : > { %v4673_v11 = vadd.f32 %v2535_v63, %v2335_v59  ;;  %3325 = vmatmul.msk.f32.gmra.mxu2 %vm262_vm1, %v4283_v15  ;;  %v3425_v63 = vld [vmem:[%s3639_s5 + $0x182] sm:$0xff] }
 0x226   : > { %3391 = vmatmul.msk.f32.gmra.mxu3 %vm262_vm1, %v3357_v47 }
 0x227   : > { %3457 = vmatmul.msk.f32.gmra.mxu0 %vm262_vm1, %v5156_v35  ;;  %2646 = vst.msk [vmem:[%s4545_s19 + $0x48] sm:$0xff] %vm2636_vm2, %v4673_v11 }
 0x228   : > { %v1982_v44 = vpop.f32.mrf.mxu2 }
 0x229   : > { %v2058_v32 = vadd.f32 %v1982_v44, %v1779_v25  ;;  %v2260_v58 = vpop.f32.mrf.mxu3  ;;  %v1706_v26 = vpop.f32.mrf.mxu1 }
 0x22a   : > { %v1780_v4 = vadd.f32 %v1706_v26, %v5158_v17  ;;  %v3427_v26 = vld [vmem:[%s3639_s5 + $0x19a] sm:$0xff] }
 0x22b   : > { %v2336_v51 = vadd.f32 %v2260_v58, %v2058_v32  ;;  %v3295_v32 = vld [vmem:[%s3639_s5 + $0x198] sm:$0xff] }
 0x22c   : > { %v2541_v52 = vpop.f32.mrf.mxu0  ;;  %3260 = vmatmul.msk.f32.gmra.mxu1 %vm262_vm1, %v5154_v6  ;;  %v5159_v6 = vld [vmem:[#allocation49_spill] sm:$0xff]  ;;  %v3361_v58 = vld [vmem:[%s3639_s5 + $0x199] sm:$0xff] }
 0x22d   : > { %v4687_v15 = vadd.f32 %v2538_v62, %v2336_v51  ;;  %3326 = vmatmul.msk.f32.gmra.mxu2 %vm262_vm1, %v4300_v19 }
 0x22e   : > { %3392 = vmatmul.msk.f32.gmra.mxu3 %vm262_vm1, %v3358_v1 }
 0x22f   : > { %3458 = vmatmul.msk.f32.gmra.mxu0 %vm262_vm1, %v4334_v37  ;;  %2647 = vst.msk [vmem:[%s4545_s19 + $0x50] sm:$0xff] %vm2636_vm2, %v4687_v15 }
 0x230   : > { %v1985_v39 = vpop.f32.mrf.mxu2 }
 0x231   : > { %v2059_v41 = vadd.f32 %v1985_v39, %v1780_v4  ;;  %v2263_v56 = vpop.f32.mrf.mxu3  ;;  %v1709_v45 = vpop.f32.mrf.mxu1  ;;  %v3296_v39 = vld [vmem:[%s3639_s5 + $0x1a0] sm:$0xff] }
 0x232   : > { %v1781_v61 = vadd.f32 %v1709_v45, %v5159_v6 }
 0x233   : > { %v2337_v12 = vadd.f32 %v2263_v56, %v2059_v41  ;;  %v3362_v56 = vld [vmem:[%s3639_s5 + $0x1a1] sm:$0xff] }
 0x234   : > { %v2544_v21 = vpop.f32.mrf.mxu0  ;;  %3261 = vmatmul.msk.f32.gmra.mxu1 %vm262_vm1, %v5156_v35 }
 0x235   : > { %v4701_v19 = vadd.f32 %v2541_v52, %v2337_v12  ;;  %3327 = vmatmul.msk.f32.gmra.mxu2 %vm262_vm1, %v4317_v23  ;;  %v3426_v23 = vld [vmem:[%s3639_s5 + $0x18a] sm:$0xff]  ;;  %v3428_v12 = vld [vmem:[%s3639_s5 + $0x1a2] sm:$0xff] }
 0x236   : > { %3393 = vmatmul.msk.f32.gmra.mxu3 %vm262_vm1, %v4320_v28  ;;  %v5160_v28 = vld [vmem:[#allocation51_spill] sm:$0xff] }
 0x237   : > { %3459 = vmatmul.msk.f32.gmra.mxu0 %vm262_vm1, %v3425_v63  ;;  %2648 = vst.msk [vmem:[%s4545_s19 + $0x58] sm:$0xff] %vm2636_vm2, %v4701_v19 }
 0x238   : > { %v1988_v31 = vpop.f32.mrf.mxu2 }
 0x239   : > { %v2060_v16 = vadd.f32 %v1988_v31, %v1781_v61  ;;  %v2266_v33 = vpop.f32.mrf.mxu3  ;;  %v1712_v43 = vpop.f32.mrf.mxu1 }
 0x23a   : > { %v1782_v62 = vadd.f32 %v1712_v43, %v5160_v28 }
 0x23b   : > { %v2338_v0 = vadd.f32 %v2266_v33, %v2060_v16 }
 0x23c   : > { %v2547_v59 = vpop.f32.mrf.mxu0  ;;  %3262 = vmatmul.msk.f32.gmra.mxu1 %vm262_vm1, %v4334_v37 }
 0x23d   : > { %v4715_v47 = vadd.f32 %v2544_v21, %v2338_v0  ;;  %3328 = vmatmul.msk.f32.gmra.mxu2 %vm262_vm1, %v4337_v30 }
 0x23e   : > { %3394 = vmatmul.msk.f32.gmra.mxu3 %vm262_vm1, %v4340_v9 }
 0x23f   : > { %3460 = vmatmul.msk.f32.gmra.mxu0 %vm262_vm1, %v3426_v23  ;;  %2649 = vst.msk [vmem:[%s4545_s19 + $0x60] sm:$0xff] %vm2636_vm2, %v4715_v47 }
 0x240   : > { %v1991_v35 = vpop.f32.mrf.mxu2 }
 0x241   : > { %v2061_v60 = vadd.f32 %v1991_v35, %v1782_v62  ;;  %v2269_v25 = vpop.f32.mrf.mxu3  ;;  %v1715_v44 = vpop.f32.mrf.mxu1 }
 0x242   : > { %v1783_v51 = vadd.f32 %v1715_v44, %v4342_v8 }
 0x243   : > { %v2339_v37 = vadd.f32 %v2269_v25, %v2061_v60 }
 0x244   : > { %v2550_v30 = vpop.f32.mrf.mxu0  ;;  %3263 = vmatmul.msk.f32.gmra.mxu1 %vm262_vm1, %v3425_v63 }
 0x245   : > { %v4731_v9 = vadd.f32 %v2547_v59, %v2339_v37  ;;  %3329 = vmatmul.msk.f32.gmra.mxu2 %vm262_vm1, %v3295_v32 }
 0x246   : > { %3395 = vmatmul.msk.f32.gmra.mxu3 %vm262_vm1, %v3361_v58 }
 0x247   : > { %3461 = vmatmul.msk.f32.gmra.mxu0 %vm262_vm1, %v3427_v26  ;;  %2650 = vst.msk [vmem:[%s4545_s19 + $0x68] sm:$0xff] %vm2636_vm2, %v4731_v9 }
 0x248   : > { %v1994_v1 = vpop.f32.mrf.mxu2 }
 0x249   : > { %v2062_v52 = vadd.f32 %v1994_v1, %v1783_v51  ;;  %v2272_v17 = vpop.f32.mrf.mxu3  ;;  %v1718_v4 = vpop.f32.mrf.mxu1 }
 0x24a   : > { %v1784_v8 = vadd.f32 %v1718_v4, %v4353_v3 }
 0x24b   : > { %v2340_v41 = vadd.f32 %v2272_v17, %v2062_v52 }
 0x24c   : > { %v2553_v45 = vpop.f32.mrf.mxu0  ;;  %3264 = vmatmul.msk.f32.gmra.mxu1 %vm262_vm1, %v3426_v23 }
 0x24d   : > { %v4744_v21 = vadd.f32 %v2550_v30, %v2340_v41  ;;  %3330 = vmatmul.msk.f32.gmra.mxu2 %vm262_vm1, %v3296_v39 }
 0x24e   : > { %3396 = vmatmul.msk.f32.gmra.mxu3 %vm262_vm1, %v3362_v56 }
 0x24f   : > { %3462 = vmatmul.msk.f32.gmra.mxu0 %vm262_vm1, %v3428_v12  ;;  %2651 = vst.msk [vmem:[%s4545_s19 + $0x70] sm:$0xff] %vm2636_vm2, %v4744_v21 }
 0x250   : > { %v1997_v63 = vpop.f32.mrf.mxu2 }
 0x251   : > { %v2063_v6 = vadd.f32 %v1997_v63, %v1784_v8  ;;  %v2275_v61 = vpop.f32.mrf.mxu3  ;;  %v1721_v31 = vpop.f32.mrf.mxu1 }
 0x252   : > { %v1785_v0 = vadd.f32 %v1721_v31, %v4364_v10 }
 0x253   : > { %v2341_v16 = vadd.f32 %v2275_v61, %v2063_v6 }
 0x254   : > { %v2556_v33 = vpop.f32.mrf.mxu0 }
 0x255   : > { %v4754_v43 = vadd.f32 %v2553_v45, %v2341_v16 }
 0x257   : > { %2652 = vst.msk [vmem:[%s4545_s19 + $0x78] sm:$0xff] %vm2636_vm2, %v4754_v43 }
 0x258   : > { %v2000_v59 = vpop.f32.mrf.mxu2 }
 0x259   : > { %v2064_v23 = vadd.f32 %v2000_v59, %v1785_v0  ;;  %v2278_v3 = vpop.f32.mrf.mxu3  ;;  %v1724_v28 = vpop.f32.mrf.mxu1 }
 0x25a   : > { %v1786_v25 = vadd.f32 %v1724_v28, %v4375_v42 }
 0x25b   : > { %v2342_v62 = vadd.f32 %v2278_v3, %v2064_v23 }
 0x25c   : > { %v2559_v35 = vpop.f32.mrf.mxu0 }
 0x25d   : > { %v4760_v60 = vadd.f32 %v2556_v33, %v2342_v62 }
 0x25f   : > { %2653 = vst.msk [vmem:[%s4545_s19 + $0x80] sm:$0xff] %vm2636_vm2, %v4760_v60 }
 0x260   : > { %v2003_v44 = vpop.f32.mrf.mxu2 }
 0x261   : > { %v2065_v32 = vadd.f32 %v2003_v44, %v1786_v25  ;;  %v2281_v10 = vpop.f32.mrf.mxu3  ;;  %v1727_v37 = vpop.f32.mrf.mxu1 }
 0x262   : > { %v1787_v51 = vadd.f32 %v1727_v37, %v4386_v46 }
 0x263   : > { %v2343_v58 = vadd.f32 %v2281_v10, %v2065_v32 }
 0x264   : > { %v2562_v30 = vpop.f32.mrf.mxu0 }
 0x265   : > { %v4766_v26 = vadd.f32 %v2559_v35, %v2343_v58 }
 0x267   : > { %2654 = vst.msk [vmem:[%s4545_s19 + $0x88] sm:$0xff] %vm2636_vm2, %v4766_v26 }
 0x268   : > { %v2006_v1 = vpop.f32.mrf.mxu2 }
 0x269   : > { %v2066_v52 = vadd.f32 %v2006_v1, %v1787_v51  ;;  %v2284_v42 = vpop.f32.mrf.mxu3  ;;  %v1730_v17 = vpop.f32.mrf.mxu1 }
 0x26a   : > { %v1788_v56 = vadd.f32 %v1730_v17, %v4398_v53 }
 0x26b   : > { %v2344_v4 = vadd.f32 %v2284_v42, %v2066_v52 }
 0x26c   : > { %v2565_v39 = vpop.f32.mrf.mxu0 }
 0x26d   : > { %v4772_v41 = vadd.f32 %v2562_v30, %v2344_v4 }
 0x26f   : > { %2655 = vst.msk [vmem:[%s4545_s19 + $0x90] sm:$0xff] %vm2636_vm2, %v4772_v41 }
 0x270   : > { %v2009_v45 = vpop.f32.mrf.mxu2 }
 0x271   : > { %v2067_v12 = vadd.f32 %v2009_v45, %v1788_v56  ;;  %v2287_v46 = vpop.f32.mrf.mxu3  ;;  %v1733_v8 = vpop.f32.mrf.mxu1 }
 0x272   : > { %v1789_v31 = vadd.f32 %v1733_v8, %v4409_v50 }
 0x273   : > { %v2345_v63 = vadd.f32 %v2287_v46, %v2067_v12 }
 0x274   : > { %v2568_v6 = vpop.f32.mrf.mxu0 }
 0x275   : > { %v4778_v61 = vadd.f32 %v2565_v39, %v2345_v63 }
 0x277   : > { %2656 = vst.msk [vmem:[%s4545_s19 + $0x98] sm:$0xff] %vm2636_vm2, %v4778_v61 }
 0x278   : > { %v2012_v16 = vpop.f32.mrf.mxu2 }
 0x279   : > { %v2068_v33 = vadd.f32 %v2012_v16, %v1789_v31  ;;  %v2290_v53 = vpop.f32.mrf.mxu3  ;;  %v1736_v0 = vpop.f32.mrf.mxu1 }
 0x27a   : > { %v1790_v28 = vadd.f32 %v1736_v0, %v4420_v24 }
 0x27b   : > { %v2346_v59 = vadd.f32 %v2290_v53, %v2068_v33 }
 0x27c   : > { %v2571_v23 = vpop.f32.mrf.mxu0 }
 0x27d   : > { %v4784_v3 = vadd.f32 %v2568_v6, %v2346_v59 }
 0x27f   : > { %2657 = vst.msk [vmem:[%s4545_s19 + $0xa0] sm:$0xff] %vm2636_vm2, %v4784_v3 }
 0x280   : > { %v2015_v62 = vpop.f32.mrf.mxu2 }
 0x281   : > { %v2069_v35 = vadd.f32 %v2015_v62, %v1790_v28  ;;  %v2293_v50 = vpop.f32.mrf.mxu3  ;;  %v1739_v25 = vpop.f32.mrf.mxu1 }
 0x282   : > { %v1791_v37 = vadd.f32 %v1739_v25, %v4431_v49 }
 0x283   : > { %v2347_v44 = vadd.f32 %v2293_v50, %v2069_v35 }
 0x284   : > { %v2574_v32 = vpop.f32.mrf.mxu0 }
 0x285   : > { %v4790_v10 = vadd.f32 %v2571_v23, %v2347_v44 }
 0x287   : > { %2658 = vst.msk [vmem:[%s4545_s19 + $0xa8] sm:$0xff] %vm2636_vm2, %v4790_v10 }
 0x288   : > { %v2018_v58 = vpop.f32.mrf.mxu2 }
 0x289   : > { %v2070_v30 = vadd.f32 %v2018_v58, %v1791_v37  ;;  %v2296_v24 = vpop.f32.mrf.mxu3  ;;  %v1742_v51 = vpop.f32.mrf.mxu1 }
 0x28a   : > { %v1792_v17 = vadd.f32 %v1742_v51, %v4442_v57 }
 0x28b   : > { %v2348_v1 = vadd.f32 %v2296_v24, %v2070_v30 }
 0x28c   : > { %v2577_v52 = vpop.f32.mrf.mxu0 }
 0x28d   : > { %v4796_v42 = vadd.f32 %v2574_v32, %v2348_v1 }
 0x28f   : > { %2659 = vst.msk [vmem:[%s4545_s19 + $0xb0] sm:$0xff] %vm2636_vm2, %v4796_v42 }
 0x290   : > { %v2021_v4 = vpop.f32.mrf.mxu2 }
 0x291   : > { %v2071_v39 = vadd.f32 %v2021_v4, %v1792_v17  ;;  %v2299_v49 = vpop.f32.mrf.mxu3  ;;  %v1745_v56 = vpop.f32.mrf.mxu1 }
 0x292   : > { %v1793_v8 = vadd.f32 %v1745_v56, %v4453_v5 }
 0x293   : > { %v2349_v45 = vadd.f32 %v2299_v49, %v2071_v39 }
 0x294   : > { %v2580_v12 = vpop.f32.mrf.mxu0 }
 0x295   : > { %v4802_v46 = vadd.f32 %v2577_v52, %v2349_v45 }
 0x297   : > { %2660 = vst.msk [vmem:[%s4545_s19 + $0xb8] sm:$0xff] %vm2636_vm2, %v4802_v46 }
 0x298   : > { %v2024_v63 = vpop.f32.mrf.mxu2 }
 0x299   : > { %v2072_v6 = vadd.f32 %v2024_v63, %v1793_v8  ;;  %v2302_v57 = vpop.f32.mrf.mxu3  ;;  %v1748_v31 = vpop.f32.mrf.mxu1 }
 0x29a   : > { %v1794_v0 = vadd.f32 %v1748_v31, %v4464_v54 }
 0x29b   : > { %v2350_v16 = vadd.f32 %v2302_v57, %v2072_v6 }
 0x29c   : > { %v2583_v33 = vpop.f32.mrf.mxu0 }
 0x29d   : > { %v4808_v53 = vadd.f32 %v2580_v12, %v2350_v16 }
 0x29f   : > { %2661 = vst.msk [vmem:[%s4545_s19 + $0xc0] sm:$0xff] %vm2636_vm2, %v4808_v53 }
 0x2a0   : > { %v2027_v59 = vpop.f32.mrf.mxu2 }
 0x2a1   : > { %v2073_v23 = vadd.f32 %v2027_v59, %v1794_v0  ;;  %v2305_v5 = vpop.f32.mrf.mxu3  ;;  %v1751_v28 = vpop.f32.mrf.mxu1 }
 0x2a2   : > { %v1795_v25 = vadd.f32 %v1751_v28, %v4475_v36 }
 0x2a3   : > { %v2351_v62 = vadd.f32 %v2305_v5, %v2073_v23 }
 0x2a4   : > { %v2586_v35 = vpop.f32.mrf.mxu0 }
 0x2a5   : > { %v4814_v50 = vadd.f32 %v2583_v33, %v2351_v62 }
 0x2a7   : > { %2662 = vst.msk [vmem:[%s4545_s19 + $0xc8] sm:$0xff] %vm2636_vm2, %v4814_v50 }
 0x2a8   : > { %v2030_v44 = vpop.f32.mrf.mxu2 }
 0x2a9   : > { %v2074_v32 = vadd.f32 %v2030_v44, %v1795_v25  ;;  %v2308_v54 = vpop.f32.mrf.mxu3  ;;  %v1754_v37 = vpop.f32.mrf.mxu1 }
 0x2aa   : > { %v1796_v51 = vadd.f32 %v1754_v37, %v4486_v20 }
 0x2ab   : > { %v2352_v58 = vadd.f32 %v2308_v54, %v2074_v32 }
 0x2ac   : > { %v2589_v30 = vpop.f32.mrf.mxu0 }
 0x2ad   : > { %v4820_v24 = vadd.f32 %v2586_v35, %v2352_v58 }
 0x2af   : > { %2663 = vst.msk [vmem:[%s4545_s19 + $0xd0] sm:$0xff] %vm2636_vm2, %v4820_v24 }
 0x2b0   : > { %v2033_v1 = vpop.f32.mrf.mxu2 }
 0x2b1   : > { %v2075_v52 = vadd.f32 %v2033_v1, %v1796_v51  ;;  %v2311_v36 = vpop.f32.mrf.mxu3  ;;  %v1757_v17 = vpop.f32.mrf.mxu1 }
 0x2b2   : > { %v1797_v56 = vadd.f32 %v1757_v17, %v4497_v55 }
 0x2b3   : > { %v2353_v4 = vadd.f32 %v2311_v36, %v2075_v52 }
 0x2b4   : > { %v2592_v39 = vpop.f32.mrf.mxu0 }
 0x2b5   : > { %v4826_v49 = vadd.f32 %v2589_v30, %v2353_v4 }
 0x2b7   : > { %2664 = vst.msk [vmem:[%s4545_s19 + $0xd8] sm:$0xff] %vm2636_vm2, %v4826_v49 }
 0x2b8   : > { %v2036_v45 = vpop.f32.mrf.mxu2 }
 0x2b9   : > { %v2076_v20 = vadd.f32 %v2036_v45, %v1797_v56  ;;  %v2314_v12 = vpop.f32.mrf.mxu3  ;;  %v1760_v8 = vpop.f32.mrf.mxu1 }
 0x2ba   : > { %v1798_v31 = vadd.f32 %v1760_v8, %v4508_v48 }
 0x2bb   : > { %v2354_v63 = vadd.f32 %v2314_v12, %v2076_v20 }
 0x2bc   : > { %v2595_v57 = vpop.f32.mrf.mxu0 }
 0x2bd   : > { %v4832_v6 = vadd.f32 %v2592_v39, %v2354_v63 }
 0x2bf   : > { %2665 = vst.msk [vmem:[%s4545_s19 + $0xe0] sm:$0xff] %vm2636_vm2, %v4832_v6 }
 0x2c0   : > { %v2039_v16 = vpop.f32.mrf.mxu2 }
 0x2c1   : > { %v2077_v55 = vadd.f32 %v2039_v16, %v1798_v31  ;;  %v2317_v33 = vpop.f32.mrf.mxu3  ;;  %v1763_v0 = vpop.f32.mrf.mxu1 }
 0x2c2   : > { %v1799_v5 = vadd.f32 %v1763_v0, %v4519_v40 }
 0x2c3   : > { %v2355_v59 = vadd.f32 %v2317_v33, %v2077_v55 }
 0x2c4   : > { %v2598_v62 = vpop.f32.mrf.mxu0 }
 0x2c5   : > { %v4838_v23 = vadd.f32 %v2595_v57, %v2355_v59 }
 0x2c7   : > { %2666 = vst.msk [vmem:[%s4545_s19 + $0xe8] sm:$0xff] %vm2636_vm2, %v4838_v23 }
 0x2c8   : > { %v2042_v28 = vpop.f32.mrf.mxu2 }
 0x2c9   : > { %v2078_v48 = vadd.f32 %v2042_v28, %v1799_v5  ;;  %v2320_v35 = vpop.f32.mrf.mxu3  ;;  %v1766_v44 = vpop.f32.mrf.mxu1 }
 0x2ca   : > { %v1800_v54 = vadd.f32 %v1766_v44, %v4530_v2 }
 0x2cb   : > { %v2356_v25 = vadd.f32 %v2320_v35, %v2078_v48 }
 0x2cc   : > { %v2601_v30 = vpop.f32.mrf.mxu0 }
 0x2cd   : > { %v4844_v32 = vadd.f32 %v2598_v62, %v2356_v25 }
 0x2cf   : > { %2667 = vst.msk [vmem:[%s4545_s19 + $0xf0] sm:$0xff] %vm2636_vm2, %v4844_v32 }
 0x2d0   : > { %v2045_v37 = vpop.f32.mrf.mxu2 }
 0x2d1   : > { %v2079_v58 = vadd.f32 %v2045_v37, %v1800_v54  ;;  %v2323_v40 = vpop.f32.mrf.mxu3 }
 0x2d3   : > { %v2357_v51 = vadd.f32 %v2323_v40, %v2079_v58  ;;  %2672 = sbr.rel (%p3463_p4) target bundleno = 731 (0x2db), region = 32 }
 0x2d5   : > { %v4850_v1 = vadd.f32 %v2601_v30, %v2357_v51 }
 0x2d7   : > { %2668 = vst.msk [vmem:[%s4545_s19 + $0xf8] sm:$0xff] %vm2636_vm2, %v4850_v1 }
 0x2d8   : > { %vm2673_vm3 = vcmask 57344   ;;  %v3570_v52 = vmov 0.0  }
 0x2d9   : > { %2674 = vst.msk [vmem:[#allocation2] sm:$0x1] %vm2673_vm3, %v3570_v52 }
 0x2da   : > { %2675 = vst.msk [vmem:[#allocation4] sm:$0x1] %vm2673_vm3, %v3570_v52 }
 0x2db PF: > { %v2677_v2 = vsel %vm2636_vm2, %v4547_v27, 0.0  ;;  %v2678_v36 = vsel %vm2636_vm2, %v4561_v13, 0.0  ;;  %v2680_v17 = vsel %vm2636_vm2, %v4575_v14, 0.0  ;;  %v2682_v39 = vsel %vm2636_vm2, %v4589_v18, 0.0  ;;  %s3571_s20 = smov [#allocation2]   ;;  %s2869_s24 = sshll.u32 %s5043_s3, 4  ;;  %s2870_s24 = int_to_ptr.hbm [resolvable:$true] %s2869_s24 }
 0x2dc   : > { %v2679_v4 = vadd.f32 %v2678_v36, %v2677_v2  ;;  %v2684_v45 = vsel %vm2636_vm2, %v4603_v22, 0.0  ;;  %v2686_v12 = vsel %vm2636_vm2, %v4617_v29, 0.0  ;;  %v2688_v63 = vsel %vm2636_vm2, %v4631_v34, 0.0  ;;  %s2867_s21 = sshll.u32 %s3571_s20, 4  ;;  %p3483_p5 = scmp.eq.s32.totalorder %s3604_s16, 1  ;;  %s2868_s21 = int_to_ptr.vmem [resolvable:$true] %s2867_s21 }
 0x2dd   : > { %v2750_v57 = vmul.f32 %v4547_v27, %v4547_v27  ;;  %v2751_v16 = vmul.f32 %v4561_v13, %v4561_v13  ;;  %v2752_v55 = vmul.f32 %v4575_v14, %v4575_v14  ;;  %v2690_v33 = vsel %vm2636_vm2, %v4645_v38, 0.0  ;;  %s3572_s25 = smov [#allocation4]   ;;  %s2881_s29 = sshll.u32 %s5044_s4, 4  ;;  %s2882_s29 = int_to_ptr.hbm [resolvable:$true] %s2881_s29 }
 0x2de   : > { %v2681_v56 = vadd.f32 %v2680_v17, %v2679_v4  ;;  %v2753_v59 = vmul.f32 %v4589_v18, %v4589_v18  ;;  %v2692_v5 = vsel %vm2636_vm2, %v4659_v7, 0.0  ;;  %v2754_v62 = vmul.f32 %v4603_v22, %v4603_v22  ;;  %s2879_s26 = sshll.u32 %s3572_s25, 4  ;;  %s2880_s26 = int_to_ptr.vmem [resolvable:$true] %s2879_s26 }
 0x2df   : > { %v2782_v28 = vsel %vm2636_vm2, %v2750_v57, 0.0  ;;  %v2783_v13 = vsel %vm2636_vm2, %v2751_v16, 0.0  ;;  %v2785_v14 = vsel %vm2636_vm2, %v2752_v55, 0.0  ;;  %v2694_v48 = vsel %vm2636_vm2, %v4673_v11, 0.0 }
 0x2e0   : > { %v2683_v20 = vadd.f32 %v2682_v39, %v2681_v56  ;;  %v2784_v35 = vadd.f32 %v2783_v13, %v2782_v28  ;;  %v2755_v18 = vmul.f32 %v4617_v29, %v4617_v29  ;;  %v2787_v44 = vsel %vm2636_vm2, %v2753_v59, 0.0 }
 0x2e1   : > { %v2696_v54 = vsel %vm2636_vm2, %v4687_v15, 0.0  ;;  %v2756_v22 = vmul.f32 %v4631_v34, %v4631_v34  ;;  %v2789_v40 = vsel %vm2636_vm2, %v2754_v62, 0.0  ;;  %v2698_v30 = vsel %vm2636_vm2, %v4701_v19, 0.0 }
 0x2e2   : > { %v2685_v8 = vadd.f32 %v2684_v45, %v2683_v20  ;;  %v2786_v37 = vadd.f32 %v2785_v14, %v2784_v35  ;;  %v2757_v29 = vmul.f32 %v4645_v38, %v4645_v38  ;;  %v2791_v2 = vsel %vm2636_vm2, %v2755_v18, 0.0 }
 0x2e3   : > { %v2700_v36 = vsel %vm2636_vm2, %v4715_v47, 0.0  ;;  %v2758_v34 = vmul.f32 %v4659_v7, %v4659_v7  ;;  %v2793_v39 = vsel %vm2636_vm2, %v2756_v22, 0.0  ;;  %v2702_v56 = vsel %vm2636_vm2, %v4731_v9, 0.0 }
 0x2e4   : > { %v2687_v31 = vadd.f32 %v2686_v12, %v2685_v8  ;;  %v2788_v51 = vadd.f32 %v2787_v44, %v2786_v37  ;;  %v2759_v38 = vmul.f32 %v4673_v11, %v4673_v11  ;;  %v2795_v12 = vsel %vm2636_vm2, %v2757_v29, 0.0 }
 0x2e5   : > { %v2704_v8 = vsel %vm2636_vm2, %v4744_v21, 0.0  ;;  %v2760_v7 = vmul.f32 %v4687_v15, %v4687_v15  ;;  %v2706_v16 = vsel %vm2636_vm2, %v4754_v43, 0.0  ;;  %v2761_v11 = vmul.f32 %v4701_v19, %v4701_v19 }
 0x2e6   : > { %v2689_v0 = vadd.f32 %v2688_v63, %v2687_v31  ;;  %v2790_v17 = vadd.f32 %v2789_v40, %v2788_v51  ;;  %v2797_v31 = vsel %vm2636_vm2, %v2758_v34, 0.0  ;;  %v2708_v59 = vsel %vm2636_vm2, %v4760_v60, 0.0 }
 0x2e7   : > { %v2762_v15 = vmul.f32 %v4715_v47, %v4715_v47  ;;  %v2710_v62 = vsel %vm2636_vm2, %v4766_v26, 0.0  ;;  %v2763_v19 = vmul.f32 %v4731_v9, %v4731_v9  ;;  %v2712_v35 = vsel %vm2636_vm2, %v4772_v41, 0.0 }
 0x2e8   : > { %v2691_v27 = vadd.f32 %v2690_v33, %v2689_v0  ;;  %v2792_v45 = vadd.f32 %v2791_v2, %v2790_v17  ;;  %v2799_v0 = vsel %vm2636_vm2, %v2759_v38, 0.0  ;;  %v2764_v47 = vmul.f32 %v4744_v21, %v4744_v21 }
 0x2e9   : > { %v2805_v44 = vsel %vm2636_vm2, %v2762_v15, 0.0  ;;  %v2765_v9 = vmul.f32 %v4754_v43, %v4754_v43  ;;  %v2807_v22 = vsel %vm2636_vm2, %v2763_v19, 0.0  ;;  %v2716_v40 = vsel %vm2636_vm2, %v4784_v3, 0.0 }
 0x2ea   : > { %v2693_v25 = vadd.f32 %v2692_v5, %v2691_v27  ;;  %v2794_v63 = vadd.f32 %v2793_v39, %v2792_v45  ;;  %v2801_v27 = vsel %vm2636_vm2, %v2760_v7, 0.0  ;;  %v2766_v21 = vmul.f32 %v4760_v60, %v4760_v60 }
 0x2eb   : > { %v2718_v29 = vsel %vm2636_vm2, %v4790_v10, 0.0  ;;  %v2767_v43 = vmul.f32 %v4766_v26, %v4766_v26  ;;  %v2811_v17 = vsel %vm2636_vm2, %v2765_v9, 0.0  ;;  %v2768_v60 = vmul.f32 %v4772_v41, %v4772_v41 }
 0x2ec   : > { %v2695_v58 = vadd.f32 %v2694_v48, %v2693_v25  ;;  %v2796_v55 = vadd.f32 %v2795_v12, %v2794_v63  ;;  %v2803_v48 = vsel %vm2636_vm2, %v2761_v11, 0.0  ;;  %v2722_v45 = vsel %vm2636_vm2, %v4802_v46, 0.0 }
 0x2ed   : > { %v2769_v26 = vmul.f32 %v4778_v61, %v4778_v61  ;;  %v2815_v12 = vsel %vm2636_vm2, %v2767_v43, 0.0  ;;  %v2770_v41 = vmul.f32 %v4784_v3, %v4784_v3  ;;  %v2817_v7 = vsel %vm2636_vm2, %v2768_v60, 0.0 }
 0x2ee   : > { %v2697_v52 = vadd.f32 %v2696_v54, %v2695_v58  ;;  %v2798_v5 = vadd.f32 %v2797_v31, %v2796_v55  ;;  %v2714_v54 = vsel %vm2636_vm2, %v4778_v61, 0.0  ;;  %v2726_v31 = vsel %vm2636_vm2, %v4814_v50, 0.0 }
 0x2ef   : > { %v2771_v61 = vmul.f32 %v4790_v10, %v4790_v10  ;;  %v2728_v11 = vsel %vm2636_vm2, %v4820_v24, 0.0  ;;  %v2772_v3 = vmul.f32 %v4796_v42, %v4796_v42  ;;  %v2773_v10 = vmul.f32 %v4802_v46, %v4802_v46 }
 0x2f0   : > { %v2699_v4 = vadd.f32 %v2698_v30, %v2697_v52  ;;  %v2800_v13 = vadd.f32 %v2799_v0, %v2798_v5  ;;  %v2809_v52 = vsel %vm2636_vm2, %v2764_v47, 0.0  ;;  %v2821_v5 = vsel %vm2636_vm2, %v2770_v41, 0.0 }
 0x2f1   : > { %v2775_v46 = vmul.f32 %v4814_v50, %v4814_v50  ;;  %v2827_v47 = vsel %vm2636_vm2, %v2773_v10, 0.0  ;;  %v2738_v9 = vsel %vm2636_vm2, %v4850_v1, 0.0  ;;  %v2777_v50 = vmul.f32 %v4826_v49, %v4826_v49 }
 0x2f2   : > { %v2701_v20 = vadd.f32 %v2700_v36, %v2699_v4  ;;  %v2802_v25 = vadd.f32 %v2801_v27, %v2800_v13  ;;  %v2720_v4 = vsel %vm2636_vm2, %v4796_v42, 0.0  ;;  %v2732_v13 = vsel %vm2636_vm2, %v4832_v6, 0.0 }
 0x2f3   : > { %v2774_v42 = vmul.f32 %v4808_v53, %v4808_v53  ;;  %v2835_v43 = vsel %vm2636_vm2, %v2777_v50, 0.0  ;;  %vm2747_vm4 = vcmask 57344  }
 0x2f4   : > { %v2703_v57 = vadd.f32 %v2702_v56, %v2701_v20  ;;  %v2804_v37 = vadd.f32 %v2803_v48, %v2802_v25  ;;  %v2813_v56 = vsel %vm2636_vm2, %v2766_v21, 0.0  ;;  %v2825_v48 = vsel %vm2636_vm2, %v2772_v3, 0.0 }
 0x2f6   : > { %v2705_v33 = vadd.f32 %v2704_v8, %v2703_v57  ;;  %v2806_v30 = vadd.f32 %v2805_v44, %v2804_v37  ;;  %v2724_v8 = vsel %vm2636_vm2, %v4808_v53, 0.0  ;;  %v2736_v44 = vsel %vm2636_vm2, %v4844_v32, 0.0 }
 0x2f7   : > { %v2776_v53 = vmul.f32 %v4820_v24, %v4820_v24 }
 0x2f8   : > { %v2707_v28 = vadd.f32 %v2706_v16, %v2705_v33  ;;  %v2808_v2 = vadd.f32 %v2807_v22, %v2806_v30  ;;  %v2819_v33 = vsel %vm2636_vm2, %v2769_v26, 0.0  ;;  %v2831_v30 = vsel %vm2636_vm2, %v2775_v46, 0.0 }
 0x2fa   : > { %v2709_v14 = vadd.f32 %v2708_v59, %v2707_v28  ;;  %v2810_v34 = vadd.f32 %v2809_v52, %v2808_v2  ;;  %v2730_v28 = vsel %vm2636_vm2, %v4826_v49, 0.0  ;;  %v2778_v52 = vmul.f32 %v4832_v6, %v4832_v6 }
 0x2fb   : > { %v2780_v49 = vmul.f32 %v4844_v32, %v4844_v32  ;;  %v2781_v6 = vmul.f32 %v4850_v1, %v4850_v1  ;;  %v2676_v32 = vld [vmem:[#allocation2] sm:$0x1] }
 0x2fc   : > { %v2711_v18 = vadd.f32 %v2710_v62, %v2709_v14  ;;  %v2812_v20 = vadd.f32 %v2811_v17, %v2810_v34  ;;  %v2823_v62 = vsel %vm2636_vm2, %v2771_v61, 0.0  ;;  %v2837_v34 = vsel %vm2636_vm2, %v2778_v52, 0.0  ;;  %v2749_v61 = vld [vmem:[#allocation4] sm:$0x1] }
 0x2fe   : > { %v2713_v58 = vadd.f32 %v2712_v35, %v2711_v18  ;;  %v2814_v63 = vadd.f32 %v2813_v56, %v2812_v20  ;;  %v2734_v35 = vsel %vm2636_vm2, %v4838_v23, 0.0 }
 0x300   : > { %v2715_v51 = vadd.f32 %v2714_v54, %v2713_v58  ;;  %v2816_v16 = vadd.f32 %v2815_v12, %v2814_v63  ;;  %v2829_v58 = vsel %vm2636_vm2, %v2774_v42, 0.0  ;;  %v2843_v12 = vsel %vm2636_vm2, %v2781_v6, 0.0 }
 0x302   : > { %v2717_v36 = vadd.f32 %v2716_v40, %v2715_v51  ;;  %v2818_v0 = vadd.f32 %v2817_v7, %v2816_v16 }
 0x304   : > { %v2719_v39 = vadd.f32 %v2718_v29, %v2717_v36  ;;  %v2820_v15 = vadd.f32 %v2819_v33, %v2818_v0  ;;  %v2833_v29 = vsel %vm2636_vm2, %v2776_v53, 0.0  ;;  %v2779_v36 = vmul.f32 %v4838_v23, %v4838_v23 }
 0x305   : > { %v2841_v23 = vsel %vm2636_vm2, %v2780_v49, 0.0 }
 0x306   : > { %v2721_v38 = vadd.f32 %v2720_v4, %v2719_v39  ;;  %v2822_v14 = vadd.f32 %v2821_v5, %v2820_v15  ;;  %v2839_v56 = vsel %vm2636_vm2, %v2779_v36, 0.0 }
 0x308   : > { %v2723_v57 = vadd.f32 %v2722_v45, %v2721_v38  ;;  %v2824_v25 = vadd.f32 %v2823_v62, %v2822_v14 }
 0x30a   : > { %v2725_v55 = vadd.f32 %v2724_v8, %v2723_v57  ;;  %v2826_v54 = vadd.f32 %v2825_v48, %v2824_v25 }
 0x30c   : > { %v2727_v59 = vadd.f32 %v2726_v31, %v2725_v55  ;;  %v2828_v22 = vadd.f32 %v2827_v47, %v2826_v54 }
 0x30e   : > { %v2729_v27 = vadd.f32 %v2728_v11, %v2727_v59  ;;  %v2830_v51 = vadd.f32 %v2829_v58, %v2828_v22 }
 0x310   : > { %v2731_v19 = vadd.f32 %v2730_v28, %v2729_v27  ;;  %v2832_v24 = vadd.f32 %v2831_v30, %v2830_v51 }
 0x312   : > { %v2733_v18 = vadd.f32 %v2732_v13, %v2731_v19  ;;  %v2834_v17 = vadd.f32 %v2833_v29, %v2832_v24 }
 0x314   : > { %v2735_v37 = vadd.f32 %v2734_v35, %v2733_v18  ;;  %v2836_v39 = vadd.f32 %v2835_v43, %v2834_v17 }
 0x316   : > { %v2737_v40 = vadd.f32 %v2736_v44, %v2735_v37  ;;  %v2838_v45 = vadd.f32 %v2837_v34, %v2836_v39 }
 0x318   : > { %v2739_v21 = vadd.f32 %v2738_v9, %v2737_v40  ;;  %v2840_v38 = vadd.f32 %v2839_v56, %v2838_v45 }
 0x31a   : > { %v2740_v2 = vrot.slane %v2739_v21, 4  ;;  %v2842_v8 = vadd.f32 %v2841_v23, %v2840_v38 }
 0x31c   : > { %v2741_v4 = vadd.f32 %v2740_v2, %v2739_v21  ;;  %v2844_v63 = vadd.f32 %v2843_v12, %v2842_v8 }
 0x31e   : > { %v2742_v60 = vrot.slane %v2741_v4, 2  ;;  %v2845_v41 = vrot.slane %v2844_v63, 4 }
 0x320   : > { %v2743_v20 = vadd.f32 %v2742_v60, %v2741_v4  ;;  %v2846_v7 = vadd.f32 %v2845_v41, %v2844_v63 }
 0x322   : > { %v2744_v26 = vrot.slane %v2743_v20, 1  ;;  %v2847_v31 = vrot.slane %v2846_v7, 2 }
 0x324   : > { %v2745_v1 = vadd.f32 %v2744_v26, %v2743_v20  ;;  %v2848_v16 = vadd.f32 %v2847_v31, %v2846_v7 }
 0x326   : > { %v2746_v57 = vadd.f32 %v2745_v1, %v2676_v32  ;;  %v2849_v55 = vrot.slane %v2848_v16, 1 }
 0x328   : > { %2748 = vst.msk [vmem:[#allocation2] sm:$0x1] %vm2747_vm4, %v2746_v57  ;;  %v2850_v33 = vadd.f32 %v2849_v55, %v2848_v16 }
 0x329   : > { %3476 = dma.vmem_to_hbm [thread:$0]  (%p3483_p5), %s2868_s21, 16, %s2870_s24, [#allocation3]  }
 0x32a   : > { %v2851_v11 = vadd.f32 %v2850_v33, %v2749_v61 }
 0x32c   : > { %2852 = vst.msk [vmem:[#allocation4] sm:$0x1] %vm2747_vm4, %v2851_v11 }
 0x32d   : > { %3478 = dma.vmem_to_hbm [thread:$0]  (%p3483_p5), %s2880_s26, 16, %s2882_s29, [#allocation5]  }
 0x32e   : > { %3559 = dma.done.wait (%p3483_p5), [#allocation3], 16  }
 0x32f   : > { %3561 = vsyncadd (%p3483_p5), [#allocation3], 4294967280 }
 0x330   : > { %3563 = dma.done.wait (%p3483_p5), [#allocation5], 16  }
 0x331   : > { %3565 = vsyncadd (%p3483_p5), [#allocation5], 4294967280 }
 0x332 PF: > { %s17_s15 = sadd.s32 1, %s3568_s15  }
 0x333   : > { %p14_p6 = scmp.ge.s32.totalorder %s17_s15, 4  }
 0x335   :  { %16 = sbr.rel (!%p14_p6) target bundleno = 2 (0x2), region = 89 }
 0x33a   :  { %2908 = vsyncpa [#allocation3], 1 }
 0x33b   :  { %2910 = vsyncpa [#allocation3 + $0x1], 1 }
 0x33c   :  { %2911 = vsyncpa [#allocation5], 1 }

</bundles_post_ra>
